<compile_context>
chip_gen: v7x
topology: tpu7x:2x2x1
jax: 0.10.0
libtpu: 0.0.40
codegen_flags: <defaults>
</compile_context>

<pallas_src>
import functools

import numpy as np

import jax
import jax.numpy as jnp
from jax.experimental import pallas as pl
from jax.experimental.pallas import tpu as pltpu


# ----------------------------------------------------------------------------
# Shapes / internal layout constants
# ----------------------------------------------------------------------------
K = 5                      # conv kernel size
IC1, OC1 = 3, 6            # conv1 channels
IC2, OC2 = 6, 16           # conv2 channels
H0, W0 = 32, 32            # input spatial size (implied by the 16*5*5 flatten)
OH1, OW1 = 28, 28          # conv1 output spatial
PH1, PW1 = 14, 14          # pool1 output spatial
OH2, OW2 = 10, 10          # conv2 output spatial
PH2, PW2 = 5, 5            # pool2 output spatial
C1P = 8                    # conv1 out-channels padded in the internal layout
HALF1 = 128                # per-parity column block, conv1 output (>= PW1*C1P)
HALF2 = 128                # per-parity column block, conv2 output (>= PW2*OC2)
KC1 = 128                  # channel-folded conv1 contraction dim (IC1*W0=96 -> 128)
F1, F2, F3 = 120, 84, 10   # fc sizes (torch)
F1P, F2P, F3P = 128, 128, 128  # lane-padded fc sizes


# ----------------------------------------------------------------------------
# Fused, batch-blocked Pallas kernel (one grid step == one block of bb images)
# ----------------------------------------------------------------------------
def _make_net_kernel(bb):
    rows = bb * H0            # inflated row space: r = n*32 + h
    R1 = rows - 4             # conv1 output rows (valid at r = n*32 + oh, oh < 28)
    R2 = rows - 12            # conv2 output rows (valid at r = n*32 + 2*oh2, oh2 < 10)

    def kernel(x_ref, a1_ref, b1_ref, a2_ref, b2_ref,
               wf1_ref, bf1_ref, wf2_ref, bf2_ref, wf3_ref, bf3_ref,
               o_ref, s1, s2):
        f32, bf16 = jnp.float32, jnp.bfloat16

        # ---- conv1 + bias + ReLU: 5 shifted-window dots, K=128, N=256 --------
        # y1[n*32+oh, col] ; col = (ow%2)*128 + (ow//2)*8 + oc
        y1 = None
        for kh in range(K):
            lhs = x_ref[kh:kh + R1, :].astype(bf16)          # (R1, 128)
            d = jnp.dot(lhs, a1_ref[kh], preferred_element_type=f32)
            y1 = d if y1 is None else y1 + d                 # (R1, 256) f32
        y1 = jnp.maximum(y1 + b1_ref[...], 0.0)

        # ---- maxpool1 along W (even/odd column halves) -----------------------
        mw1 = jnp.maximum(y1[:, :HALF1], y1[:, HALF1:])      # (R1, 128)
        # stash in VMEM so conv2 can read shifted windows; zero the 4-row tail
        # so the kh=4 window never reads uninitialized VMEM.
        s1[rows - 8:rows, :] = jnp.zeros((8, HALF1), f32)
        s1[0:R1, :] = mw1

        # ---- conv2 + bias + ReLU (maxpool1-H folded into the window reads) ---
        # y2[n*32+2*oh2, col] ; col = (ow2%2)*128 + (ow2//2)*16 + oc
        y2 = None
        for kh in range(K):
            lhs = jnp.maximum(s1[2 * kh:2 * kh + R2, :],
                              s1[2 * kh + 1:2 * kh + 1 + R2, :]).astype(bf16)
            d = jnp.dot(lhs, a2_ref[kh], preferred_element_type=f32)
            y2 = d if y2 is None else y2 + d                 # (R2, 256) f32
        y2 = jnp.maximum(y2 + b2_ref[...], 0.0)

        # ---- maxpool2 along W -> scratch for the fc1 row gather ---------------
        s2[0:R2, :] = jnp.maximum(y2[:, :HALF2], y2[:, HALF2:])

        # ---- maxpool2 along H + flatten + fc1 (M = batch) ---------------------
        # image n's pooled row i lives at inflated rows n*32+4i (even H) and
        # n*32+4i+2 (odd H): gather both with a stride-32 sublane read, max,
        # and hit the MXU with a (bb, 128) @ (128, 128) dot per i.
        h = None
        for i in range(PH2):
            ra = s2[pl.ds(4 * i, bb, stride=H0), :]          # (bb, 128)
            rb = s2[pl.ds(4 * i + 2, bb, stride=H0), :]
            p2i = jnp.maximum(ra, rb).astype(bf16)
            d = jnp.dot(p2i, wf1_ref[i], preferred_element_type=f32)
            h = d if h is None else h + d                    # (bb, 128) f32
        h = jnp.maximum(h + bf1_ref[...], 0.0).astype(bf16)

        # ---- fc2 + ReLU, fc3 (exact 128x128 MXU tiles, lane-dense output) ----
        h = jnp.maximum(jnp.dot(h, wf2_ref[...], preferred_element_type=f32)
                        + bf2_ref[...], 0.0).astype(bf16)
        o_ref[...] = (jnp.dot(h, wf3_ref[...], preferred_element_type=f32)
                      + bf3_ref[...])                        # (bb, 128) f32

    return kernel


def _const_index_map(ndim):
    return lambda i: (0,) * ndim


def net_forward(params, x_nchw, *, block_b=64):
    """Forward pass identical to the PyTorch Net: (N, 3, 32, 32) f32 -> (N, 10).

    block_b = images per grid step (must be a multiple of 8 if N >= block_b).
    """
    n = x_nchw.shape[0]
    bb = block_b if n >= block_b else n
    n_pad = ((n + bb - 1) // bb) * bb
    rows = bb * H0

    # Host-side repack (cheap XLA ops): row = n*32 + h, col = c*32 + w
    # (channels folded into the contraction dim), lanes zero-padded 96 -> 128.
    xp = jnp.transpose(x_nchw, (0, 2, 1, 3)).reshape(n, H0, IC1 * W0)
    xp = jnp.pad(xp, ((0, n_pad - n), (0, 0), (0, KC1 - IC1 * W0)))
    xp = xp.reshape(n_pad * H0, KC1).astype(jnp.float32)

    names = ["A1", "B1", "A2", "B2", "WF1", "BF1", "WF2", "BF2", "WF3", "BF3"]
    weights = [params[k] for k in names]

    in_specs = [pl.BlockSpec((rows, KC1), lambda i: (i, 0))]
    in_specs += [pl.BlockSpec(w.shape, _const_index_map(w.ndim)) for w in weights]

    out = pl.pallas_call(
        _make_net_kernel(bb),
        out_shape=jax.ShapeDtypeStruct((n_pad, F3P), jnp.float32),
        grid=(n_pad // bb,),
        in_specs=in_specs,
        out_specs=pl.BlockSpec((bb, F3P), lambda i: (i, 0)),
        scratch_shapes=[pltpu.VMEM((rows, HALF1), jnp.float32),   # pooled conv1
                        pltpu.VMEM((rows, HALF2), jnp.float32)],  # pooled conv2
        compiler_params=pltpu.CompilerParams(
            dimension_semantics=("parallel",),
            vmem_limit_bytes=32 * 1024 * 1024),
    )(xp, *weights)
    return out[:n, :F3]


# ----------------------------------------------------------------------------
# Parameter init (torch layout) and one-time host-side weight repacking
# ----------------------------------------------------------------------------
def init_raw_params(key):
    """Torch-layout params with torch-default U(-1/sqrt(fan_in), 1/sqrt(fan_in))."""
    ks = jax.random.split(key, 10)

    def u(k, shape, fan_in):
        b = 1.0 / float(fan_in) ** 0.5
        return jax.random.uniform(k, shape, jnp.float32, -b, b)

    return {
        "conv1_w": u(ks[0], (OC1, IC1, K, K), IC1 * K * K),
        "conv1_b": u(ks[1], (OC1,), IC1 * K * K),
        "conv2_w": u(ks[2], (OC2, IC2, K, K), IC2 * K * K),
        "conv2_b": u(ks[3], (OC2,), IC2 * K * K),
        "fc1_w": u(ks[4], (F1, OC2 * PH2 * PW2), OC2 * PH2 * PW2),
        "fc1_b": u(ks[5], (F1,), OC2 * PH2 * PW2),
        "fc2_w": u(ks[6], (F2, F1), F1),
        "fc2_b": u(ks[7], (F2,), F1),
        "fc3_w": u(ks[8], (F3, F2), F2),
        "fc3_b": u(ks[9], (F3,), F2),
    }


def pack_params(raw):
    """Repack torch-layout weights into the kernel's block-Toeplitz layout (once).

    Matmul operands (A1, A2, WF1-3) are stored in bf16 (MXU-native on v5e/v6e/v7x);
    biases stay f32 (they are added to f32 accumulators).  Unused lanes/rows are
    zero so padded columns never leak into used outputs.
    """
    w1 = np.array(raw["conv1_w"], np.float32)
    b1 = np.array(raw["conv1_b"], np.float32)
    w2 = np.array(raw["conv2_w"], np.float32)
    b2 = np.array(raw["conv2_b"], np.float32)
    fw1 = np.array(raw["fc1_w"], np.float32)
    fb1 = np.array(raw["fc1_b"], np.float32)
    fw2 = np.array(raw["fc2_w"], np.float32)
    fb2 = np.array(raw["fc2_b"], np.float32)
    fw3 = np.array(raw["fc3_w"], np.float32)
    fb3 = np.array(raw["fc3_b"], np.float32)

    # conv1 (channel-folded K): y1[r, col] = sum_kh X[r+kh, :] @ A1[kh]
    #   X column = c*32 + w ; y1 column = (ow%2)*128 + (ow//2)*8 + oc
    A1 = np.zeros((K, KC1, 2 * HALF1), np.float32)
    B1 = np.zeros((1, 2 * HALF1), np.float32)
    for kh in range(K):
        for c in range(IC1):
            for kw in range(K):
                for oc in range(OC1):
                    for ow in range(OW1):
                        col = (ow % 2) * HALF1 + (ow // 2) * C1P + oc
                        A1[kh, c * W0 + ow + kw, col] = w1[oc, c, kh, kw]
    for oc in range(OC1):
        for ow in range(OW1):
            B1[0, (ow % 2) * HALF1 + (ow // 2) * C1P + oc] = b1[oc]

    # conv2: y2[r, col] = sum_kh P1[r + 2*kh, :] @ A2[kh]
    #   P1 column = pw1*8 + ic ; y2 column = (ow2%2)*128 + (ow2//2)*16 + oc
    A2 = np.zeros((K, HALF1, 2 * HALF2), np.float32)
    B2 = np.zeros((1, 2 * HALF2), np.float32)
    for kh in range(K):
        for ic in range(IC2):
            for kw in range(K):
                for oc in range(OC2):
                    for ow in range(OW2):
                        row = (ow + kw) * C1P + ic
                        col = (ow % 2) * HALF2 + (ow // 2) * OC2 + oc
                        A2[kh, row, col] = w2[oc, ic, kh, kw]
    for oc in range(OC2):
        for ow in range(OW2):
            B2[0, (ow % 2) * HALF2 + (ow // 2) * OC2 + oc] = b2[oc]

    # fc1: PyTorch flatten index = oc*25 + h*5 + w ; p2 column = w*OC2 + oc.
    # Lane-padded to 128 output features; unused rows/cols stay zero.
    WF1 = np.zeros((PH2, HALF2, F1P), np.float32)
    for h in range(PH2):
        for w in range(PW2):
            for oc in range(OC2):
                WF1[h, w * OC2 + oc, :F1] = fw1[:, oc * (PH2 * PW2) + h * PW2 + w]
    BF1 = np.zeros((1, F1P), np.float32)
    BF1[0, :F1] = fb1

    WF2 = np.zeros((F1P, F2P), np.float32)
    WF2[:F1, :F2] = fw2.T
    BF2 = np.zeros((1, F2P), np.float32)
    BF2[0, :F2] = fb2

    WF3 = np.zeros((F2P, F3P), np.float32)
    WF3[:F2, :F3] = fw3.T
    BF3 = np.zeros((1, F3P), np.float32)
    BF3[0, :F3] = fb3

    bf16 = jnp.bfloat16
    return {
        "A1": jnp.asarray(A1, dtype=bf16), "B1": jnp.asarray(B1),
        "A2": jnp.asarray(A2, dtype=bf16), "B2": jnp.asarray(B2),
        "WF1": jnp.asarray(WF1, dtype=bf16), "BF1": jnp.asarray(BF1),
        "WF2": jnp.asarray(WF2, dtype=bf16), "BF2": jnp.asarray(BF2),
        "WF3": jnp.asarray(WF3, dtype=bf16), "BF3": jnp.asarray(BF3),
    }


# ----------------------------------------------------------------------------
# Pure-JAX reference (mirrors the PyTorch module) for a correctness check
# ----------------------------------------------------------------------------
def reference_forward(raw, x):
    prec = jax.lax.Precision.HIGHEST
    dn = ("NCHW", "OIHW", "NCHW")
    y = jax.lax.conv_general_dilated(x, raw["conv1_w"], (1, 1), "VALID",
                                     dimension_numbers=dn, precision=prec)
    y = jax.nn.relu(y + raw["conv1_b"].reshape(1, -1, 1, 1))
    y = jax.lax.reduce_window(y, -jnp.inf, jax.lax.max, (1, 1, 2, 2), (1, 1, 2, 2), "VALID")
    y = jax.lax.conv_general_dilated(y, raw["conv2_w"], (1, 1), "VALID",
                                     dimension_numbers=dn, precision=prec)
    y = jax.nn.relu(y + raw["conv2_b"].reshape(1, -1, 1, 1))
    y = jax.lax.reduce_window(y, -jnp.inf, jax.lax.max, (1, 1, 2, 2), (1, 1, 2, 2), "VALID")
    y = y.reshape(y.shape[0], -1)                       # (N, 400) in (C, H, W) order
    y = jax.nn.relu(jnp.dot(y, raw["fc1_w"].T, precision=prec) + raw["fc1_b"])
    y = jax.nn.relu(jnp.dot(y, raw["fc2_w"].T, precision=prec) + raw["fc2_b"])
    return jnp.dot(y, raw["fc3_w"].T, precision=prec) + raw["fc3_b"]


if __name__ == "__main__":
    key = jax.random.PRNGKey(0)
    k_param, k_x = jax.random.split(key)
    raw = init_raw_params(k_param)
    params = pack_params(raw)

    # Net implies 3x32x32 inputs (CIFAR-10 size) so that flatten == 16*5*5.
    x = jax.random.normal(k_x, (2, IC1, H0, W0), dtype=jnp.float32)

    fwd = jax.jit(net_forward)
    out = jax.block_until_ready(fwd(params, x))
    assert out.shape == (2, F3), out.shape
    assert bool(jnp.all(jnp.isfinite(out)))
    ref = jax.block_until_ready(reference_forward(raw, x))
    err = float(jnp.max(jnp.abs(out - ref)))
    # bf16 MXU operands with f32 accumulation -> a few 1e-3 of absolute error.
    assert err < 5e-2, f"batch=2 mismatch vs reference: max abs err = {err}"

    # Exercise the batch-blocked multi-step grid + batch padding path
    # (N=20, block_b=8 -> 3 grid steps, 4 padded images).
    x2 = jax.random.normal(jax.random.PRNGKey(1), (20, IC1, H0, W0), dtype=jnp.float32)
    fwd8 = jax.jit(functools.partial(net_forward, block_b=8))
    out2 = jax.block_until_ready(fwd8(params, x2))
    ref2 = jax.block_until_ready(reference_forward(raw, x2))
    err2 = float(jnp.max(jnp.abs(out2 - ref2)))
    assert out2.shape == (20, F3), out2.shape
    assert err2 < 5e-2, f"batch=20 mismatch vs reference: max abs err = {err2}"

    print("KERNEL_OK")
</pallas_src>

<mosaic_0001>
module attributes {stable_mosaic.version = 11 : i64} {
  func.func @kernel(%arg0: i32, %arg1: memref<64x128xf32, #tpu.memory_space<vmem>>, %arg2: memref<5x128x256xbf16, #tpu.memory_space<vmem>>, %arg3: memref<1x256xf32, #tpu.memory_space<vmem>>, %arg4: memref<5x128x256xbf16, #tpu.memory_space<vmem>>, %arg5: memref<1x256xf32, #tpu.memory_space<vmem>>, %arg6: memref<5x128x128xbf16, #tpu.memory_space<vmem>>, %arg7: memref<1x128xf32, #tpu.memory_space<vmem>>, %arg8: memref<128x128xbf16, #tpu.memory_space<vmem>>, %arg9: memref<1x128xf32, #tpu.memory_space<vmem>>, %arg10: memref<128x128xbf16, #tpu.memory_space<vmem>>, %arg11: memref<1x128xf32, #tpu.memory_space<vmem>>, %arg12: memref<2x128xf32, #tpu.memory_space<vmem>>, %arg13: memref<64x128xf32, #tpu.memory_space<vmem>>, %arg14: memref<64x128xf32, #tpu.memory_space<vmem>>) attributes {dimension_semantics = [#tpu.dimension_semantics<parallel>], iteration_bounds = array<i64: 1>, scalar_prefetch = 0 : i64, scratch_operands = 2 : i64, tpu.core_type = #tpu.core_type<tc>, window_params = [{transform_indices = @transform_0, window_bounds = array<i64: 64, 128>}, {pipeline_mode = #tpu.pipeline_mode<synchronous>, transform_indices = @transform_1, window_bounds = array<i64: 5, 128, 256>}, {pipeline_mode = #tpu.pipeline_mode<synchronous>, transform_indices = @transform_2, window_bounds = array<i64: 1, 256>}, {pipeline_mode = #tpu.pipeline_mode<synchronous>, transform_indices = @transform_3, window_bounds = array<i64: 5, 128, 256>}, {pipeline_mode = #tpu.pipeline_mode<synchronous>, transform_indices = @transform_4, window_bounds = array<i64: 1, 256>}, {pipeline_mode = #tpu.pipeline_mode<synchronous>, transform_indices = @transform_5, window_bounds = array<i64: 5, 128, 128>}, {pipeline_mode = #tpu.pipeline_mode<synchronous>, transform_indices = @transform_6, window_bounds = array<i64: 1, 128>}, {pipeline_mode = #tpu.pipeline_mode<synchronous>, transform_indices = @transform_7, window_bounds = array<i64: 128, 128>}, {pipeline_mode = #tpu.pipeline_mode<synchronous>, transform_indices = @transform_8, window_bounds = array<i64: 1, 128>}, {pipeline_mode = #tpu.pipeline_mode<synchronous>, transform_indices = @transform_9, window_bounds = array<i64: 128, 128>}, {pipeline_mode = #tpu.pipeline_mode<synchronous>, transform_indices = @transform_10, window_bounds = array<i64: 1, 128>}, {transform_indices = @transform_11, window_bounds = array<i64: 2, 128>}]} {
    %c0 = arith.constant 0 : index
    %c0_0 = arith.constant 0 : index
    %0 = vector.load %arg1[%c0, %c0_0] : memref<64x128xf32, #tpu.memory_space<vmem>>, vector<60x128xf32>
    %1 = arith.truncf %0 : vector<60x128xf32> to vector<60x128xbf16>
    %c0_1 = arith.constant 0 : index
    %c0_2 = arith.constant 0 : index
    %c0_3 = arith.constant 0 : index
    %2 = vector.load %arg2[%c0_1, %c0_2, %c0_3] : memref<5x128x256xbf16, #tpu.memory_space<vmem>>, vector<1x128x256xbf16>
    %3 = vector.shape_cast %2 : vector<1x128x256xbf16> to vector<128x256xbf16>
    %cst = arith.constant dense<0.000000e+00> : vector<60x256xf32>
    %4 = tpu.matmul %1, %3, %cst {dimension_numbers = #tpu.dot_dimension_numbers<[1], [0], [0], [1], [0, 0, 1, 1], [], []>} : vector<60x128xbf16>, vector<128x256xbf16>, vector<60x256xf32> -> vector<60x256xf32>
    %c1 = arith.constant 1 : index
    %c0_4 = arith.constant 0 : index
    %5 = vector.load %arg1[%c1, %c0_4] : memref<64x128xf32, #tpu.memory_space<vmem>>, vector<60x128xf32>
    %6 = arith.truncf %5 : vector<60x128xf32> to vector<60x128xbf16>
    %c1_5 = arith.constant 1 : index
    %c0_6 = arith.constant 0 : index
    %c0_7 = arith.constant 0 : index
    %7 = vector.load %arg2[%c1_5, %c0_6, %c0_7] : memref<5x128x256xbf16, #tpu.memory_space<vmem>>, vector<1x128x256xbf16>
    %8 = vector.shape_cast %7 : vector<1x128x256xbf16> to vector<128x256xbf16>
    %cst_8 = arith.constant dense<0.000000e+00> : vector<60x256xf32>
    %9 = tpu.matmul %6, %8, %cst_8 {dimension_numbers = #tpu.dot_dimension_numbers<[1], [0], [0], [1], [0, 0, 1, 1], [], []>} : vector<60x128xbf16>, vector<128x256xbf16>, vector<60x256xf32> -> vector<60x256xf32>
    %10 = arith.addf %4, %9 : vector<60x256xf32>
    %c2 = arith.constant 2 : index
    %c0_9 = arith.constant 0 : index
    %11 = vector.load %arg1[%c2, %c0_9] : memref<64x128xf32, #tpu.memory_space<vmem>>, vector<60x128xf32>
    %12 = arith.truncf %11 : vector<60x128xf32> to vector<60x128xbf16>
    %c2_10 = arith.constant 2 : index
    %c0_11 = arith.constant 0 : index
    %c0_12 = arith.constant 0 : index
    %13 = vector.load %arg2[%c2_10, %c0_11, %c0_12] : memref<5x128x256xbf16, #tpu.memory_space<vmem>>, vector<1x128x256xbf16>
    %14 = vector.shape_cast %13 : vector<1x128x256xbf16> to vector<128x256xbf16>
    %cst_13 = arith.constant dense<0.000000e+00> : vector<60x256xf32>
    %15 = tpu.matmul %12, %14, %cst_13 {dimension_numbers = #tpu.dot_dimension_numbers<[1], [0], [0], [1], [0, 0, 1, 1], [], []>} : vector<60x128xbf16>, vector<128x256xbf16>, vector<60x256xf32> -> vector<60x256xf32>
    %16 = arith.addf %10, %15 : vector<60x256xf32>
    %c3 = arith.constant 3 : index
    %c0_14 = arith.constant 0 : index
    %17 = vector.load %arg1[%c3, %c0_14] : memref<64x128xf32, #tpu.memory_space<vmem>>, vector<60x128xf32>
    %18 = arith.truncf %17 : vector<60x128xf32> to vector<60x128xbf16>
    %c3_15 = arith.constant 3 : index
    %c0_16 = arith.constant 0 : index
    %c0_17 = arith.constant 0 : index
    %19 = vector.load %arg2[%c3_15, %c0_16, %c0_17] : memref<5x128x256xbf16, #tpu.memory_space<vmem>>, vector<1x128x256xbf16>
    %20 = vector.shape_cast %19 : vector<1x128x256xbf16> to vector<128x256xbf16>
    %cst_18 = arith.constant dense<0.000000e+00> : vector<60x256xf32>
    %21 = tpu.matmul %18, %20, %cst_18 {dimension_numbers = #tpu.dot_dimension_numbers<[1], [0], [0], [1], [0, 0, 1, 1], [], []>} : vector<60x128xbf16>, vector<128x256xbf16>, vector<60x256xf32> -> vector<60x256xf32>
    %22 = arith.addf %16, %21 : vector<60x256xf32>
    %c4 = arith.constant 4 : index
    %c0_19 = arith.constant 0 : index
    %23 = vector.load %arg1[%c4, %c0_19] : memref<64x128xf32, #tpu.memory_space<vmem>>, vector<60x128xf32>
    %24 = arith.truncf %23 : vector<60x128xf32> to vector<60x128xbf16>
    %c4_20 = arith.constant 4 : index
    %c0_21 = arith.constant 0 : index
    %c0_22 = arith.constant 0 : index
    %25 = vector.load %arg2[%c4_20, %c0_21, %c0_22] : memref<5x128x256xbf16, #tpu.memory_space<vmem>>, vector<1x128x256xbf16>
    %26 = vector.shape_cast %25 : vector<1x128x256xbf16> to vector<128x256xbf16>
    %cst_23 = arith.constant dense<0.000000e+00> : vector<60x256xf32>
    %27 = tpu.matmul %24, %26, %cst_23 {dimension_numbers = #tpu.dot_dimension_numbers<[1], [0], [0], [1], [0, 0, 1, 1], [], []>} : vector<60x128xbf16>, vector<128x256xbf16>, vector<60x256xf32> -> vector<60x256xf32>
    %28 = arith.addf %22, %27 : vector<60x256xf32>
    %c0_24 = arith.constant 0 : index
    %c0_25 = arith.constant 0 : index
    %29 = vector.load %arg3[%c0_24, %c0_25] : memref<1x256xf32, #tpu.memory_space<vmem>>, vector<1x256xf32>
    %30 = vector.broadcast %29 : vector<1x256xf32> to vector<60x256xf32>
    %31 = arith.addf %28, %30 : vector<60x256xf32>
    %cst_26 = arith.constant 0.000000e+00 : f32
    %32 = vector.broadcast %cst_26 : f32 to vector<60x256xf32>
    %33 = arith.maximumf %31, %32 : vector<60x256xf32>
    %34 = vector.extract_strided_slice %33 {offsets = [0, 0], sizes = [60, 128], strides = [1, 1]} : vector<60x256xf32> to vector<60x128xf32>
    %35 = vector.extract_strided_slice %33 {offsets = [0, 128], sizes = [60, 128], strides = [1, 1]} : vector<60x256xf32> to vector<60x128xf32>
    %36 = arith.maximumf %34, %35 : vector<60x128xf32>
    %cst_27 = arith.constant 0.000000e+00 : f32
    %37 = vector.broadcast %cst_27 : f32 to vector<8x128xf32>
    %c56 = arith.constant 56 : index
    %c0_28 = arith.constant 0 : index
    %38 = vector.load %arg13[%c56, %c0_28] : memref<64x128xf32, #tpu.memory_space<vmem>>, vector<8x128xf32>
    tpu.vector_store %arg13[%c56, %c0_28], %37 {strides = array<i32>} : memref<64x128xf32, #tpu.memory_space<vmem>>, vector<8x128xf32>,
    %c0_29 = arith.constant 0 : index
    %c0_30 = arith.constant 0 : index
    %39 = vector.load %arg13[%c0_29, %c0_30] : memref<64x128xf32, #tpu.memory_space<vmem>>, vector<60x128xf32>
    tpu.vector_store %arg13[%c0_29, %c0_30], %36 {strides = array<i32>} : memref<64x128xf32, #tpu.memory_space<vmem>>, vector<60x128xf32>,
    %c0_31 = arith.constant 0 : index
    %c0_32 = arith.constant 0 : index
    %40 = vector.load %arg13[%c0_31, %c0_32] : memref<64x128xf32, #tpu.memory_space<vmem>>, vector<52x128xf32>
    %c1_33 = arith.constant 1 : index
    %c0_34 = arith.constant 0 : index
    %41 = vector.load %arg13[%c1_33, %c0_34] : memref<64x128xf32, #tpu.memory_space<vmem>>, vector<52x128xf32>
    %42 = arith.maximumf %40, %41 : vector<52x128xf32>
    %43 = arith.truncf %42 : vector<52x128xf32> to vector<52x128xbf16>
    %c0_35 = arith.constant 0 : index
    %c0_36 = arith.constant 0 : index
    %c0_37 = arith.constant 0 : index
    %44 = vector.load %arg4[%c0_35, %c0_36, %c0_37] : memref<5x128x256xbf16, #tpu.memory_space<vmem>>, vector<1x128x256xbf16>
    %45 = vector.shape_cast %44 : vector<1x128x256xbf16> to vector<128x256xbf16>
    %cst_38 = arith.constant dense<0.000000e+00> : vector<52x256xf32>
    %46 = tpu.matmul %43, %45, %cst_38 {dimension_numbers = #tpu.dot_dimension_numbers<[1], [0], [0], [1], [0, 0, 1, 1], [], []>} : vector<52x128xbf16>, vector<128x256xbf16>, vector<52x256xf32> -> vector<52x256xf32>
    %c2_39 = arith.constant 2 : index
    %c0_40 = arith.constant 0 : index
    %47 = vector.load %arg13[%c2_39, %c0_40] : memref<64x128xf32, #tpu.memory_space<vmem>>, vector<52x128xf32>
    %c3_41 = arith.constant 3 : index
    %c0_42 = arith.constant 0 : index
    %48 = vector.load %arg13[%c3_41, %c0_42] : memref<64x128xf32, #tpu.memory_space<vmem>>, vector<52x128xf32>
    %49 = arith.maximumf %47, %48 : vector<52x128xf32>
    %50 = arith.truncf %49 : vector<52x128xf32> to vector<52x128xbf16>
    %c1_43 = arith.constant 1 : index
    %c0_44 = arith.constant 0 : index
    %c0_45 = arith.constant 0 : index
    %51 = vector.load %arg4[%c1_43, %c0_44, %c0_45] : memref<5x128x256xbf16, #tpu.memory_space<vmem>>, vector<1x128x256xbf16>
    %52 = vector.shape_cast %51 : vector<1x128x256xbf16> to vector<128x256xbf16>
    %cst_46 = arith.constant dense<0.000000e+00> : vector<52x256xf32>
    %53 = tpu.matmul %50, %52, %cst_46 {dimension_numbers = #tpu.dot_dimension_numbers<[1], [0], [0], [1], [0, 0, 1, 1], [], []>} : vector<52x128xbf16>, vector<128x256xbf16>, vector<52x256xf32> -> vector<52x256xf32>
    %54 = arith.addf %46, %53 : vector<52x256xf32>
    %c4_47 = arith.constant 4 : index
    %c0_48 = arith.constant 0 : index
    %55 = vector.load %arg13[%c4_47, %c0_48] : memref<64x128xf32, #tpu.memory_space<vmem>>, vector<52x128xf32>
    %c5 = arith.constant 5 : index
    %c0_49 = arith.constant 0 : index
    %56 = vector.load %arg13[%c5, %c0_49] : memref<64x128xf32, #tpu.memory_space<vmem>>, vector<52x128xf32>
    %57 = arith.maximumf %55, %56 : vector<52x128xf32>
    %58 = arith.truncf %57 : vector<52x128xf32> to vector<52x128xbf16>
    %c2_50 = arith.constant 2 : index
    %c0_51 = arith.constant 0 : index
    %c0_52 = arith.constant 0 : index
    %59 = vector.load %arg4[%c2_50, %c0_51, %c0_52] : memref<5x128x256xbf16, #tpu.memory_space<vmem>>, vector<1x128x256xbf16>
    %60 = vector.shape_cast %59 : vector<1x128x256xbf16> to vector<128x256xbf16>
    %cst_53 = arith.constant dense<0.000000e+00> : vector<52x256xf32>
    %61 = tpu.matmul %58, %60, %cst_53 {dimension_numbers = #tpu.dot_dimension_numbers<[1], [0], [0], [1], [0, 0, 1, 1], [], []>} : vector<52x128xbf16>, vector<128x256xbf16>, vector<52x256xf32> -> vector<52x256xf32>
    %62 = arith.addf %54, %61 : vector<52x256xf32>
    %c6 = arith.constant 6 : index
    %c0_54 = arith.constant 0 : index
    %63 = vector.load %arg13[%c6, %c0_54] : memref<64x128xf32, #tpu.memory_space<vmem>>, vector<52x128xf32>
    %c7 = arith.constant 7 : index
    %c0_55 = arith.constant 0 : index
    %64 = vector.load %arg13[%c7, %c0_55] : memref<64x128xf32, #tpu.memory_space<vmem>>, vector<52x128xf32>
    %65 = arith.maximumf %63, %64 : vector<52x128xf32>
    %66 = arith.truncf %65 : vector<52x128xf32> to vector<52x128xbf16>
    %c3_56 = arith.constant 3 : index
    %c0_57 = arith.constant 0 : index
    %c0_58 = arith.constant 0 : index
    %67 = vector.load %arg4[%c3_56, %c0_57, %c0_58] : memref<5x128x256xbf16, #tpu.memory_space<vmem>>, vector<1x128x256xbf16>
    %68 = vector.shape_cast %67 : vector<1x128x256xbf16> to vector<128x256xbf16>
    %cst_59 = arith.constant dense<0.000000e+00> : vector<52x256xf32>
    %69 = tpu.matmul %66, %68, %cst_59 {dimension_numbers = #tpu.dot_dimension_numbers<[1], [0], [0], [1], [0, 0, 1, 1], [], []>} : vector<52x128xbf16>, vector<128x256xbf16>, vector<52x256xf32> -> vector<52x256xf32>
    %70 = arith.addf %62, %69 : vector<52x256xf32>
    %c8 = arith.constant 8 : index
    %c0_60 = arith.constant 0 : index
    %71 = vector.load %arg13[%c8, %c0_60] : memref<64x128xf32, #tpu.memory_space<vmem>>, vector<52x128xf32>
    %c9 = arith.constant 9 : index
    %c0_61 = arith.constant 0 : index
    %72 = vector.load %arg13[%c9, %c0_61] : memref<64x128xf32, #tpu.memory_space<vmem>>, vector<52x128xf32>
    %73 = arith.maximumf %71, %72 : vector<52x128xf32>
    %74 = arith.truncf %73 : vector<52x128xf32> to vector<52x128xbf16>
    %c4_62 = arith.constant 4 : index
    %c0_63 = arith.constant 0 : index
    %c0_64 = arith.constant 0 : index
    %75 = vector.load %arg4[%c4_62, %c0_63, %c0_64] : memref<5x128x256xbf16, #tpu.memory_space<vmem>>, vector<1x128x256xbf16>
    %76 = vector.shape_cast %75 : vector<1x128x256xbf16> to vector<128x256xbf16>
    %cst_65 = arith.constant dense<0.000000e+00> : vector<52x256xf32>
    %77 = tpu.matmul %74, %76, %cst_65 {dimension_numbers = #tpu.dot_dimension_numbers<[1], [0], [0], [1], [0, 0, 1, 1], [], []>} : vector<52x128xbf16>, vector<128x256xbf16>, vector<52x256xf32> -> vector<52x256xf32>
    %78 = arith.addf %70, %77 : vector<52x256xf32>
    %c0_66 = arith.constant 0 : index
    %c0_67 = arith.constant 0 : index
    %79 = vector.load %arg5[%c0_66, %c0_67] : memref<1x256xf32, #tpu.memory_space<vmem>>, vector<1x256xf32>
    %80 = vector.broadcast %79 : vector<1x256xf32> to vector<52x256xf32>
    %81 = arith.addf %78, %80 : vector<52x256xf32>
    %cst_68 = arith.constant 0.000000e+00 : f32
    %82 = vector.broadcast %cst_68 : f32 to vector<52x256xf32>
    %83 = arith.maximumf %81, %82 : vector<52x256xf32>
    %84 = vector.extract_strided_slice %83 {offsets = [0, 0], sizes = [52, 128], strides = [1, 1]} : vector<52x256xf32> to vector<52x128xf32>
    %85 = vector.extract_strided_slice %83 {offsets = [0, 128], sizes = [52, 128], strides = [1, 1]} : vector<52x256xf32> to vector<52x128xf32>
    %86 = arith.maximumf %84, %85 : vector<52x128xf32>
    %c0_69 = arith.constant 0 : index
    %c0_70 = arith.constant 0 : index
    %87 = vector.load %arg14[%c0_69, %c0_70] : memref<64x128xf32, #tpu.memory_space<vmem>>, vector<52x128xf32>
    tpu.vector_store %arg14[%c0_69, %c0_70], %86 {strides = array<i32>} : memref<64x128xf32, #tpu.memory_space<vmem>>, vector<52x128xf32>,
    %c0_71 = arith.constant 0 : index
    %c0_72 = arith.constant 0 : index
    %88 = tpu.strided_load %arg14[%c0_71, %c0_72] {strides = array<i32: 32, 1>} : memref<64x128xf32, #tpu.memory_space<vmem>>, vector<2x128xf32>
    %c2_73 = arith.constant 2 : index
    %c0_74 = arith.constant 0 : index
    %89 = tpu.strided_load %arg14[%c2_73, %c0_74] {strides = array<i32: 32, 1>} : memref<64x128xf32, #tpu.memory_space<vmem>>, vector<2x128xf32>
    %90 = arith.maximumf %88, %89 : vector<2x128xf32>
    %91 = arith.truncf %90 : vector<2x128xf32> to vector<2x128xbf16>
    %c0_75 = arith.constant 0 : index
    %c0_76 = arith.constant 0 : index
    %c0_77 = arith.constant 0 : index
    %92 = vector.load %arg6[%c0_75, %c0_76, %c0_77] : memref<5x128x128xbf16, #tpu.memory_space<vmem>>, vector<1x128x128xbf16>
    %93 = vector.shape_cast %92 : vector<1x128x128xbf16> to vector<128x128xbf16>
    %cst_78 = arith.constant dense<0.000000e+00> : vector<2x128xf32>
    %94 = tpu.matmul %91, %93, %cst_78 {dimension_numbers = #tpu.dot_dimension_numbers<[1], [0], [0], [1], [0, 0, 1, 1], [], []>} : vector<2x128xbf16>, vector<128x128xbf16>, vector<2x128xf32> -> vector<2x128xf32>
    %c4_79 = arith.constant 4 : index
    %c0_80 = arith.constant 0 : index
    %95 = tpu.strided_load %arg14[%c4_79, %c0_80] {strides = array<i32: 32, 1>} : memref<64x128xf32, #tpu.memory_space<vmem>>, vector<2x128xf32>
    %c6_81 = arith.constant 6 : index
    %c0_82 = arith.constant 0 : index
    %96 = tpu.strided_load %arg14[%c6_81, %c0_82] {strides = array<i32: 32, 1>} : memref<64x128xf32, #tpu.memory_space<vmem>>, vector<2x128xf32>
    %97 = arith.maximumf %95, %96 : vector<2x128xf32>
    %98 = arith.truncf %97 : vector<2x128xf32> to vector<2x128xbf16>
    %c1_83 = arith.constant 1 : index
    %c0_84 = arith.constant 0 : index
    %c0_85 = arith.constant 0 : index
    %99 = vector.load %arg6[%c1_83, %c0_84, %c0_85] : memref<5x128x128xbf16, #tpu.memory_space<vmem>>, vector<1x128x128xbf16>
    %100 = vector.shape_cast %99 : vector<1x128x128xbf16> to vector<128x128xbf16>
    %cst_86 = arith.constant dense<0.000000e+00> : vector<2x128xf32>
    %101 = tpu.matmul %98, %100, %cst_86 {dimension_numbers = #tpu.dot_dimension_numbers<[1], [0], [0], [1], [0, 0, 1, 1], [], []>} : vector<2x128xbf16>, vector<128x128xbf16>, vector<2x128xf32> -> vector<2x128xf32>
    %102 = arith.addf %94, %101 : vector<2x128xf32>
    %c8_87 = arith.constant 8 : index
    %c0_88 = arith.constant 0 : index
    %103 = tpu.strided_load %arg14[%c8_87, %c0_88] {strides = array<i32: 32, 1>} : memref<64x128xf32, #tpu.memory_space<vmem>>, vector<2x128xf32>
    %c10 = arith.constant 10 : index
    %c0_89 = arith.constant 0 : index
    %104 = tpu.strided_load %arg14[%c10, %c0_89] {strides = array<i32: 32, 1>} : memref<64x128xf32, #tpu.memory_space<vmem>>, vector<2x128xf32>
    %105 = arith.maximumf %103, %104 : vector<2x128xf32>
    %106 = arith.truncf %105 : vector<2x128xf32> to vector<2x128xbf16>
    %c2_90 = arith.constant 2 : index
    %c0_91 = arith.constant 0 : index
    %c0_92 = arith.constant 0 : index
    %107 = vector.load %arg6[%c2_90, %c0_91, %c0_92] : memref<5x128x128xbf16, #tpu.memory_space<vmem>>, vector<1x128x128xbf16>
    %108 = vector.shape_cast %107 : vector<1x128x128xbf16> to vector<128x128xbf16>
    %cst_93 = arith.constant dense<0.000000e+00> : vector<2x128xf32>
    %109 = tpu.matmul %106, %108, %cst_93 {dimension_numbers = #tpu.dot_dimension_numbers<[1], [0], [0], [1], [0, 0, 1, 1], [], []>} : vector<2x128xbf16>, vector<128x128xbf16>, vector<2x128xf32> -> vector<2x128xf32>
    %110 = arith.addf %102, %109 : vector<2x128xf32>
    %c12 = arith.constant 12 : index
    %c0_94 = arith.constant 0 : index
    %111 = tpu.strided_load %arg14[%c12, %c0_94] {strides = array<i32: 32, 1>} : memref<64x128xf32, #tpu.memory_space<vmem>>, vector<2x128xf32>
    %c14 = arith.constant 14 : index
    %c0_95 = arith.constant 0 : index
    %112 = tpu.strided_load %arg14[%c14, %c0_95] {strides = array<i32: 32, 1>} : memref<64x128xf32, #tpu.memory_space<vmem>>, vector<2x128xf32>
    %113 = arith.maximumf %111, %112 : vector<2x128xf32>
    %114 = arith.truncf %113 : vector<2x128xf32> to vector<2x128xbf16>
    %c3_96 = arith.constant 3 : index
    %c0_97 = arith.constant 0 : index
    %c0_98 = arith.constant 0 : index
    %115 = vector.load %arg6[%c3_96, %c0_97, %c0_98] : memref<5x128x128xbf16, #tpu.memory_space<vmem>>, vector<1x128x128xbf16>
    %116 = vector.shape_cast %115 : vector<1x128x128xbf16> to vector<128x128xbf16>
    %cst_99 = arith.constant dense<0.000000e+00> : vector<2x128xf32>
    %117 = tpu.matmul %114, %116, %cst_99 {dimension_numbers = #tpu.dot_dimension_numbers<[1], [0], [0], [1], [0, 0, 1, 1], [], []>} : vector<2x128xbf16>, vector<128x128xbf16>, vector<2x128xf32> -> vector<2x128xf32>
    %118 = arith.addf %110, %117 : vector<2x128xf32>
    %c16 = arith.constant 16 : index
    %c0_100 = arith.constant 0 : index
    %119 = tpu.strided_load %arg14[%c16, %c0_100] {strides = array<i32: 32, 1>} : memref<64x128xf32, #tpu.memory_space<vmem>>, vector<2x128xf32>
    %c18 = arith.constant 18 : index
    %c0_101 = arith.constant 0 : index
    %120 = tpu.strided_load %arg14[%c18, %c0_101] {strides = array<i32: 32, 1>} : memref<64x128xf32, #tpu.memory_space<vmem>>, vector<2x128xf32>
    %121 = arith.maximumf %119, %120 : vector<2x128xf32>
    %122 = arith.truncf %121 : vector<2x128xf32> to vector<2x128xbf16>
    %c4_102 = arith.constant 4 : index
    %c0_103 = arith.constant 0 : index
    %c0_104 = arith.constant 0 : index
    %123 = vector.load %arg6[%c4_102, %c0_103, %c0_104] : memref<5x128x128xbf16, #tpu.memory_space<vmem>>, vector<1x128x128xbf16>
    %124 = vector.shape_cast %123 : vector<1x128x128xbf16> to vector<128x128xbf16>
    %cst_105 = arith.constant dense<0.000000e+00> : vector<2x128xf32>
    %125 = tpu.matmul %122, %124, %cst_105 {dimension_numbers = #tpu.dot_dimension_numbers<[1], [0], [0], [1], [0, 0, 1, 1], [], []>} : vector<2x128xbf16>, vector<128x128xbf16>, vector<2x128xf32> -> vector<2x128xf32>
    %126 = arith.addf %118, %125 : vector<2x128xf32>
    %c0_106 = arith.constant 0 : index
    %c0_107 = arith.constant 0 : index
    %127 = vector.load %arg7[%c0_106, %c0_107] : memref<1x128xf32, #tpu.memory_space<vmem>>, vector<1x128xf32>
    %128 = vector.broadcast %127 : vector<1x128xf32> to vector<2x128xf32>
    %129 = arith.addf %126, %128 : vector<2x128xf32>
    %cst_108 = arith.constant 0.000000e+00 : f32
    %130 = vector.broadcast %cst_108 : f32 to vector<2x128xf32>
    %131 = arith.maximumf %129, %130 : vector<2x128xf32>
    %132 = arith.truncf %131 : vector<2x128xf32> to vector<2x128xbf16>
    %c0_109 = arith.constant 0 : index
    %c0_110 = arith.constant 0 : index
    %133 = vector.load %arg8[%c0_109, %c0_110] : memref<128x128xbf16, #tpu.memory_space<vmem>>, vector<128x128xbf16>
    %cst_111 = arith.constant dense<0.000000e+00> : vector<2x128xf32>
    %134 = tpu.matmul %132, %133, %cst_111 {dimension_numbers = #tpu.dot_dimension_numbers<[1], [0], [0], [1], [0, 0, 1, 1], [], []>} : vector<2x128xbf16>, vector<128x128xbf16>, vector<2x128xf32> -> vector<2x128xf32>
    %c0_112 = arith.constant 0 : index
    %c0_113 = arith.constant 0 : index
    %135 = vector.load %arg9[%c0_112, %c0_113] : memref<1x128xf32, #tpu.memory_space<vmem>>, vector<1x128xf32>
    %136 = vector.broadcast %135 : vector<1x128xf32> to vector<2x128xf32>
    %137 = arith.addf %134, %136 : vector<2x128xf32>
    %cst_114 = arith.constant 0.000000e+00 : f32
    %138 = vector.broadcast %cst_114 : f32 to vector<2x128xf32>
    %139 = arith.maximumf %137, %138 : vector<2x128xf32>
    %140 = arith.truncf %139 : vector<2x128xf32> to vector<2x128xbf16>
    %c0_115 = arith.constant 0 : index
    %c0_116 = arith.constant 0 : index
    %141 = vector.load %arg10[%c0_115, %c0_116] : memref<128x128xbf16, #tpu.memory_space<vmem>>, vector<128x128xbf16>
    %cst_117 = arith.constant dense<0.000000e+00> : vector<2x128xf32>
    %142 = tpu.matmul %140, %141, %cst_117 {dimension_numbers = #tpu.dot_dimension_numbers<[1], [0], [0], [1], [0, 0, 1, 1], [], []>} : vector<2x128xbf16>, vector<128x128xbf16>, vector<2x128xf32> -> vector<2x128xf32>
    %c0_118 = arith.constant 0 : index
    %c0_119 = arith.constant 0 : index
    %143 = vector.load %arg11[%c0_118, %c0_119] : memref<1x128xf32, #tpu.memory_space<vmem>>, vector<1x128xf32>
    %144 = vector.broadcast %143 : vector<1x128xf32> to vector<2x128xf32>
    %145 = arith.addf %142, %144 : vector<2x128xf32>
    %c0_120 = arith.constant 0 : index
    %c0_121 = arith.constant 0 : index
    %146 = vector.load %arg12[%c0_120, %c0_121] : memref<2x128xf32, #tpu.memory_space<vmem>>, vector<2x128xf32>
    tpu.vector_store %arg12[%c0_120, %c0_121], %145 {strides = array<i32>} : memref<2x128xf32, #tpu.memory_space<vmem>>, vector<2x128xf32>,
    return
  }
  func.func @transform_0(%arg0: i32) -> (i32, i32) {
    %c0_i32 = arith.constant 0 : i32
    %c0_i32_0 = arith.constant 0 : i32
    return %arg0, %c0_i32 : i32, i32
  }
  func.func @transform_1(%arg0: i32) -> (i32, i32, i32) {
    %c0_i32 = arith.constant 0 : i32
    %c0_i32_0 = arith.constant 0 : i32
    %c0_i32_1 = arith.constant 0 : i32
    %c0_i32_2 = arith.constant 0 : i32
    return %c0_i32, %c0_i32_0, %c0_i32_1 : i32, i32, i32
  }
  func.func @transform_2(%arg0: i32) -> (i32, i32) {
    %c0_i32 = arith.constant 0 : i32
    %c0_i32_0 = arith.constant 0 : i32
    %c0_i32_1 = arith.constant 0 : i32
    return %c0_i32, %c0_i32_0 : i32, i32
  }
  func.func @transform_3(%arg0: i32) -> (i32, i32, i32) {
    %c0_i32 = arith.constant 0 : i32
    %c0_i32_0 = arith.constant 0 : i32
    %c0_i32_1 = arith.constant 0 : i32
    %c0_i32_2 = arith.constant 0 : i32
    return %c0_i32, %c0_i32_0, %c0_i32_1 : i32, i32, i32
  }
  func.func @transform_4(%arg0: i32) -> (i32, i32) {
    %c0_i32 = arith.constant 0 : i32
    %c0_i32_0 = arith.constant 0 : i32
    %c0_i32_1 = arith.constant 0 : i32
    return %c0_i32, %c0_i32_0 : i32, i32
  }
  func.func @transform_5(%arg0: i32) -> (i32, i32, i32) {
    %c0_i32 = arith.constant 0 : i32
    %c0_i32_0 = arith.constant 0 : i32
    %c0_i32_1 = arith.constant 0 : i32
    %c0_i32_2 = arith.constant 0 : i32
    return %c0_i32, %c0_i32_0, %c0_i32_1 : i32, i32, i32
  }
  func.func @transform_6(%arg0: i32) -> (i32, i32) {
    %c0_i32 = arith.constant 0 : i32
    %c0_i32_0 = arith.constant 0 : i32
    %c0_i32_1 = arith.constant 0 : i32
    return %c0_i32, %c0_i32_0 : i32, i32
  }
  func.func @transform_7(%arg0: i32) -> (i32, i32) {
    %c0_i32 = arith.constant 0 : i32
    %c0_i32_0 = arith.constant 0 : i32
    %c0_i32_1 = arith.constant 0 : i32
    return %c0_i32, %c0_i32_0 : i32, i32
  }
  func.func @transform_8(%arg0: i32) -> (i32, i32) {
    %c0_i32 = arith.constant 0 : i32
    %c0_i32_0 = arith.constant 0 : i32
    %c0_i32_1 = arith.constant 0 : i32
    return %c0_i32, %c0_i32_0 : i32, i32
  }
  func.func @transform_9(%arg0: i32) -> (i32, i32) {
    %c0_i32 = arith.constant 0 : i32
    %c0_i32_0 = arith.constant 0 : i32
    %c0_i32_1 = arith.constant 0 : i32
    return %c0_i32, %c0_i32_0 : i32, i32
  }
  func.func @transform_10(%arg0: i32) -> (i32, i32) {
    %c0_i32 = arith.constant 0 : i32
    %c0_i32_0 = arith.constant 0 : i32
    %c0_i32_1 = arith.constant 0 : i32
    return %c0_i32, %c0_i32_0 : i32, i32
  }
  func.func @transform_11(%arg0: i32) -> (i32, i32) {
    %c0_i32 = arith.constant 0 : i32
    %c0_i32_0 = arith.constant 0 : i32
    return %arg0, %c0_i32 : i32, i32
  }
}

</mosaic_0001>

<bundles_post_ra>
// kernel: net_forward.1
= control target key start
LH: loop header
LB: loop body
LE: loop exit
PB: predicated region body
PF: predicated region fallthrough
CT: control target
= control target key end

     0   :  { %16 = vsyncpa [#allocation5], 0  ;;  %s4657_s0 = inlined_call_operand.vmem [shape: f32[64,128], index: 0, kind: input, shape index: {}]   ;;  %s4658_s1 = inlined_call_operand.vmem [shape: bf16[5,128,256], index: 1, kind: input, shape index: {}]   ;;  %s4659_s2 = inlined_call_operand.vmem [shape: f32[1,256], index: 2, kind: input, shape index: {}]   ;;  %s4660_s3 = inlined_call_operand.hbm [shape: bf16[5,128,256], index: 3, kind: input, shape index: {}]   ;;  %s4661_s4 = inlined_call_operand.vmem [shape: f32[1,256], index: 4, kind: input, shape index: {}]   ;;  %s4662_s5 = inlined_call_operand.hbm [shape: bf16[5,128,128], index: 5, kind: input, shape index: {}]   ;;  %s4663_s6 = inlined_call_operand.vmem [shape: f32[1,128], index: 6, kind: input, shape index: {}]   ;;  %s4664_s7 = inlined_call_operand.vmem [shape: bf16[128,128], index: 7, kind: input, shape index: {}]   ;;  %s4665_s8 = inlined_call_operand.vmem [shape: f32[1,128], index: 8, kind: input, shape index: {}]   ;;  %s4666_s9 = inlined_call_operand.vmem [shape: bf16[128,128], index: 9, kind: input, shape index: {}]   ;;  %s4667_s10 = inlined_call_operand.vmem [shape: f32[1,128], index: 10, kind: input, shape index: {}]   ;;  %s4668_s11 = inlined_call_operand.hbm [shape: f32[2,128], index: 11, kind: output, shape index: {}]  }
   0x1   :  { %17 = vsyncpa [#allocation8], 0 }
   0x2   :  { %18 = vsyncpa [#allocation6], 0  ;;  %s3949_s17 = smov [#allocation4]   ;;  %s3877_s21 = scalar_lea.hbm %s4660_s3, 10240 }
   0x3   :  { %s30_s18 = sshll.u32 %s3949_s17, 4  ;;  %p3878_p0 = scmp.ne.s32.totalorder %s4660_s3, %s3877_s21  ;;  %s31_s18 = int_to_ptr.vmem [resolvable:$true] %s30_s18 }
   0x4   :  { %p3881_p1 = scmp.lt.u32.totalorder %s3877_s21, %s4660_s3 }
   0x6   :  { %p3883_p2 = pnand %p3881_p1, %p3878_p0 }
   0x8   :  { %3886 = shalt.err (!%p3883_p2)
}
   0x9   :  { %s3887_s26 = scalar_lea.vmem %s31_s18, 10240  ;;  %p3892_p4 = scmp.lt.s32.totalorder %s31_s18, %s31_s18 }
   0xa   :  { %p3888_p3 = scmp.ne.s32.totalorder %s31_s18, %s3887_s26  ;;  %p3893_p5 = scmp.lt.s32.totalorder %s3887_s26, %s3887_s26 }
   0xc   :  { %p3894_p6 = por %p3893_p5, %p3892_p4 }
   0xe   :  { %p3895_p7 = pnand %p3894_p6, %p3888_p3 }
  0x10   :  { %3898 = shalt.err (!%p3895_p7)
}
  0x11   :  { %s3950_s27 = smov 128   ;;  %s3951_s28 = smov 8  }
  0x12   :  { %36 = dma.hbm_to_vmem [thread:$0]  %s4660_s3, 10240, %s31_s18, [#allocation5], %s3950_s27, %s3950_s27, %s3951_s28  }
  0x13   :  { %s3952_s12 = smov [#allocation7]   ;;  %s3899_s16 = scalar_lea.hbm %s4662_s5, 5120 }
  0x14   :  { %s44_s13 = sshll.u32 %s3952_s12, 4  ;;  %p3900_p8 = scmp.ne.s32.totalorder %s4662_s5, %s3899_s16  ;;  %s45_s13 = int_to_ptr.vmem [resolvable:$true] %s44_s13 }
  0x15   :  { %p3903_p9 = scmp.lt.u32.totalorder %s3899_s16, %s4662_s5 }
  0x17   :  { %p3905_p10 = pnand %p3903_p9, %p3900_p8 }
  0x19   :  { %3908 = shalt.err (!%p3905_p10)
}
  0x1a   :  { %s3909_s22 = scalar_lea.vmem %s45_s13, 5120  ;;  %p3914_p12 = scmp.lt.s32.totalorder %s45_s13, %s45_s13 }
  0x1b   :  { %p3910_p11 = scmp.ne.s32.totalorder %s45_s13, %s3909_s22  ;;  %p3915_p13 = scmp.lt.s32.totalorder %s3909_s22, %s3909_s22 }
  0x1d   :  { %p3916_p0 = por %p3915_p13, %p3914_p12 }
  0x1f   :  { %p3917_p1 = pnand %p3916_p0, %p3910_p11 }
  0x21   :  { %3920 = shalt.err (!%p3917_p1)
}
  0x22   :  { %s3953_s3 = smov 64   ;;  %s3954_s18 = smov 4  }
  0x23   :  { %50 = dma.hbm_to_vmem [thread:$0]  %s4662_s5, 5120, %s45_s13, [#allocation8], %s3953_s3, %s3953_s3, %s3954_s18  }
  0x24   :  { %3943 = dma.done.wait [#allocation5], 10240  }
  0x25   :  { %3944 = vsyncadd [#allocation5], 4294957056 }
  0x26   :  { %3945 = dma.done.wait [#allocation8], 5120  }
  0x27   :  { %3946 = vsyncadd [#allocation8], 4294962176  ;;  %v3955_v0 = vmov 0   ;;  %v3581_v1 = vld [vmem:[%s4658_s1 + $0x84] ss:$8 sps:$4 sm:$0xff]   ;;  %v98_v24 = vld [vmem:[%s4657_s0 + $0x11] sm:$0xff] }
  0x28   :  { %237 = vmatprep.mubr.bf16.mxu0 %v3955_v0  ;;  %1281 = vmatprep.mubr.bf16.mxu1 %v3955_v0  ;;  %v3583_v2 = vld [vmem:[%s4658_s1 + $0x80] ss:$8 sps:$4 sm:$0xff]   ;;  %v3584_v3 = vld [vmem:[%s4658_s1 + $0x94] ss:$8 sps:$4 sm:$0xff]   ;;  %v3586_v4 = vld [vmem:[%s4658_s1 + $0x90] ss:$8 sps:$4 sm:$0xff]  }
  0x29   :  { %205 = vmatprep.subr.bf16.mxu0 %v3581_v1  ;;  %v3587_v5 = vld [vmem:[%s4658_s1 + $0xa4] ss:$8 sps:$4 sm:$0xff]   ;;  %v3589_v6 = vld [vmem:[%s4658_s1 + $0xa0] ss:$8 sps:$4 sm:$0xff]   ;;  %v3590_v7 = vld [vmem:[%s4658_s1 + $0xb4] ss:$8 sps:$4 sm:$0xff]  }
  0x2a   :  { %206 = vmatpush1.bf16.msra.mxu0 %v3583_v2  ;;  %v3592_v8 = vld [vmem:[%s4658_s1 + $0xb0] ss:$8 sps:$4 sm:$0xff]   ;;  %v3593_v9 = vld [vmem:[%s4658_s1 + $0xc4] ss:$8 sps:$4 sm:$0xff]   ;;  %v3595_v10 = vld [vmem:[%s4658_s1 + $0xc0] ss:$8 sps:$4 sm:$0xff]  }
  0x2b   :  { %207 = vmatprep.subr.bf16.mxu0 %v3584_v3  ;;  %v3596_v11 = vld [vmem:[%s4658_s1 + $0xd4] ss:$8 sps:$4 sm:$0xff]   ;;  %v3598_v12 = vld [vmem:[%s4658_s1 + $0xd0] ss:$8 sps:$4 sm:$0xff]   ;;  %v3599_v13 = vld [vmem:[%s4658_s1 + $0xe4] ss:$8 sps:$4 sm:$0xff]  }
  0x2c   :  { %v3601_v14 = vld [vmem:[%s4658_s1 + $0xe0] ss:$8 sps:$4 sm:$0xff]   ;;  %v3602_v15 = vld [vmem:[%s4658_s1 + $0xf4] ss:$8 sps:$4 sm:$0xff]   ;;  %v3604_v16 = vld [vmem:[%s4658_s1 + $0xf0] ss:$8 sps:$4 sm:$0xff]  }
  0x2d   :  { %v96_v17 = vld [vmem:[%s4657_s0 + $0x1] sm:$0xff]  ;;  %v97_v18 = vld [vmem:[%s4657_s0 + $0x9] sm:$0xff]  ;;  %v3610_v22 = vld [vmem:[%s4658_s1 + $0x14] ss:$8 sps:$4 sm:$0xff]   ;;  %vm3957_vm0 = vmmov 0  }
  0x2e   :  { %208 = vmatpush1.bf16.msra.mxu0 %v3586_v4  ;;  %v3607_v19 = vld [vmem:[%s4658_s1 + $0x4] ss:$8 sps:$4 sm:$0xff]   ;;  %v104_v20 = vpack.c.bf16 %v97_v18, %v96_v17  ;;  %v3605_v21 = vld [vmem:[%s4658_s1] ss:$8 sps:$4 sm:$0xff]   ;;  %v3608_v23 = vld [vmem:[%s4658_s1 + $0x10] ss:$8 sps:$4 sm:$0xff]  }
  0x2f   :  { %209 = vmatprep.subr.bf16.mxu0 %v3587_v5  ;;  %v99_v25 = vld [vmem:[%s4657_s0 + $0x19] sm:$0xff]  ;;  %v3613_v26 = vld [vmem:[%s4658_s1 + $0x24] ss:$8 sps:$4 sm:$0xff]   ;;  %v102_v38 = vld [vmem:[%s4657_s0 + $0x31] sm:$0xff] }
  0x30   :  { %v105_v27 = vpack.c.bf16 %v99_v25, %v98_v24  ;;  %v3611_v28 = vld [vmem:[%s4658_s1 + $0x20] ss:$8 sps:$4 sm:$0xff]   ;;  %v3616_v29 = vld [vmem:[%s4658_s1 + $0x34] ss:$8 sps:$4 sm:$0xff]   ;;  %v3614_v30 = vld [vmem:[%s4658_s1 + $0x30] ss:$8 sps:$4 sm:$0xff]  }
  0x31   :  { %v100_v31 = vld [vmem:[%s4657_s0 + $0x21] sm:$0xff]  ;;  %v101_v32 = vld [vmem:[%s4657_s0 + $0x29] sm:$0xff]  ;;  %v3622_v36 = vld [vmem:[%s4658_s1 + $0x54] ss:$8 sps:$4 sm:$0xff]  }
  0x32   :  { %210 = vmatpush1.bf16.msra.mxu0 %v3589_v6  ;;  %v3619_v33 = vld [vmem:[%s4658_s1 + $0x44] ss:$8 sps:$4 sm:$0xff]   ;;  %v106_v34 = vpack.c.bf16 %v101_v32, %v100_v31  ;;  %v3617_v35 = vld [vmem:[%s4658_s1 + $0x40] ss:$8 sps:$4 sm:$0xff]   ;;  %v3620_v37 = vld [vmem:[%s4658_s1 + $0x50] ss:$8 sps:$4 sm:$0xff]  }
  0x33   :  { %211 = vmatprep.subr.bf16.mxu0 %v3590_v7  ;;  %v103_v39 = vld [vmem:[%s4657_s0 + $0x39] sm:$0xf]  ;;  %v3625_v40 = vld [vmem:[%s4658_s1 + $0x64] ss:$8 sps:$4 sm:$0xff]   ;;  %v3623_v42 = vld [vmem:[%s4658_s1 + $0x60] ss:$8 sps:$4 sm:$0xff]  }
  0x34   :  { %v107_v41 = vpack.c.bf16 %v103_v39, %v102_v38  ;;  %v3628_v43 = vld [vmem:[%s4658_s1 + $0x74] ss:$8 sps:$4 sm:$0xff]   ;;  %v3626_v44 = vld [vmem:[%s4658_s1 + $0x70] ss:$8 sps:$4 sm:$0xff]   ;;  %v68_v45 = vld [vmem:[%s4657_s0] sm:$0xff] }
  0x35   :  { %v69_v46 = vld [vmem:[%s4657_s0 + $0x8] sm:$0xff]  ;;  %v3634_v50 = vld [vmem:[%s4658_s1 + $0x114] ss:$8 sps:$4 sm:$0xff]   ;;  %v3632_v51 = vld [vmem:[%s4658_s1 + $0x110] ss:$8 sps:$4 sm:$0xff]  }
  0x36   :  { %212 = vmatpush1.bf16.msra.mxu0 %v3592_v8  ;;  %v3631_v47 = vld [vmem:[%s4658_s1 + $0x104] ss:$8 sps:$4 sm:$0xff]   ;;  %v76_v48 = vpack.c.bf16 %v69_v46, %v68_v45  ;;  %v3629_v49 = vld [vmem:[%s4658_s1 + $0x100] ss:$8 sps:$4 sm:$0xff]   ;;  %v70_v52 = vld [vmem:[%s4657_s0 + $0x10] sm:$0xff] }
  0x37   :  { %213 = vmatprep.subr.bf16.mxu0 %v3593_v9  ;;  %v71_v53 = vld [vmem:[%s4657_s0 + $0x18] sm:$0xff]  ;;  %v3637_v54 = vld [vmem:[%s4658_s1 + $0x124] ss:$8 sps:$4 sm:$0xff]   ;;  %v3703_v56 = vld [vmem:[#allocation4 + $0x80] ss:$8 sps:$4 sm:$0xff]  }
  0x38   :  { %v3701_v55 = vld [vmem:[#allocation4 + $0x84] ss:$8 sps:$4 sm:$0xff]   ;;  %v3635_v57 = vld [vmem:[%s4658_s1 + $0x120] ss:$8 sps:$4 sm:$0xff]   ;;  %v77_v58 = vpack.c.bf16 %v71_v53, %v70_v52  ;;  %v3640_v59 = vld [vmem:[%s4658_s1 + $0x134] ss:$8 sps:$4 sm:$0xff]  }
  0x39   :  { %1249 = vmatprep.subr.bf16.mxu1 %v3701_v55  ;;  %v3638_v60 = vld [vmem:[%s4658_s1 + $0x130] ss:$8 sps:$4 sm:$0xff]   ;;  %v72_v61 = vld [vmem:[%s4657_s0 + $0x20] sm:$0xff]  ;;  %v73_v62 = vld [vmem:[%s4657_s0 + $0x28] sm:$0xff] }
  0x3a   :  { %214 = vmatpush1.bf16.msra.mxu0 %v3595_v10  ;;  %1250 = vmatpush1.bf16.msra.mxu1 %v3703_v56  ;;  %v3643_v63 = vld [vmem:[%s4658_s1 + $0x144] ss:$8 sps:$4 sm:$0xff]   ;;  %v3641_v1 = vld [vmem:[%s4658_s1 + $0x140] ss:$8 sps:$4 sm:$0xff]   ;;  %v78_v2 = vpack.c.bf16 %v73_v62, %v72_v61  ;;  %v3646_v3 = vld [vmem:[%s4658_s1 + $0x154] ss:$8 sps:$4 sm:$0xff]  }
  0x3b   :  { %215 = vmatprep.subr.bf16.mxu0 %v3596_v11  ;;  %v3644_v4 = vld [vmem:[%s4658_s1 + $0x150] ss:$8 sps:$4 sm:$0xff]   ;;  %v3649_v7 = vld [vmem:[%s4658_s1 + $0x164] ss:$8 sps:$4 sm:$0xff]   ;;  %v3647_v8 = vld [vmem:[%s4658_s1 + $0x160] ss:$8 sps:$4 sm:$0xff]  }
  0x3c   :  { %v74_v5 = vld [vmem:[%s4657_s0 + $0x30] sm:$0xff]  ;;  %v75_v6 = vld [vmem:[%s4657_s0 + $0x38] sm:$0xf]  ;;  %v3691_v56 = vld [vmem:[%s4658_s1 + $0x244] ss:$8 sps:$4 sm:$0xff]  }
  0x3d   :  { %v79_v9 = vpack.c.bf16 %v75_v6, %v74_v5  ;;  %v3652_v10 = vld [vmem:[%s4658_s1 + $0x174] ss:$8 sps:$4 sm:$0xff]   ;;  %v3650_v11 = vld [vmem:[%s4658_s1 + $0x170] ss:$8 sps:$4 sm:$0xff]   ;;  %v827_v5 = vld [vmem:[%s4657_s0 + $0x4] sm:$0xff] }
  0x3e   :  { %216 = vmatpush1.bf16.msra.mxu0 %v3598_v12  ;;  %v431_v12 = vld [vmem:[%s4657_s0 + $0x2] sm:$0xff]  ;;  %v3658_v17 = vld [vmem:[%s4658_s1 + $0x194] ss:$8 sps:$4 sm:$0xff]   ;;  %v3656_v18 = vld [vmem:[%s4658_s1 + $0x190] ss:$8 sps:$4 sm:$0xff]  }
  0x3f   :  { %217 = vmatprep.subr.bf16.mxu0 %v3599_v13  ;;  %v432_v13 = vld [vmem:[%s4657_s0 + $0xa] sm:$0xff]  ;;  %v3664_v24 = vld [vmem:[%s4658_s1 + $0x1b4] ss:$8 sps:$4 sm:$0xff]  }
  0x40   :  { %v3662_v25 = vld [vmem:[%s4658_s1 + $0x1b0] ss:$8 sps:$4 sm:$0xff]   ;;  %v3670_v31 = vld [vmem:[%s4658_s1 + $0x1d4] ss:$8 sps:$4 sm:$0xff]  }
  0x41   :  { %v3668_v32 = vld [vmem:[%s4658_s1 + $0x1d0] ss:$8 sps:$4 sm:$0xff]   ;;  %v3676_v38 = vld [vmem:[%s4658_s1 + $0x1f4] ss:$8 sps:$4 sm:$0xff]  }
  0x42   :  { %218 = vmatpush1.bf16.msra.mxu0 %v3601_v14  ;;  %v3655_v14 = vld [vmem:[%s4658_s1 + $0x184] ss:$8 sps:$4 sm:$0xff]   ;;  %v3674_v39 = vld [vmem:[%s4658_s1 + $0x1f0] ss:$8 sps:$4 sm:$0xff]   ;;  %v3682_v45 = vld [vmem:[%s4658_s1 + $0x214] ss:$8 sps:$4 sm:$0xff]  }
  0x43   :  { %219 = vmatprep.subr.bf16.mxu0 %v3602_v15  ;;  %v3653_v15 = vld [vmem:[%s4658_s1 + $0x180] ss:$8 sps:$4 sm:$0xff]   ;;  %v3680_v46 = vld [vmem:[%s4658_s1 + $0x210] ss:$8 sps:$4 sm:$0xff]   ;;  %v3688_v52 = vld [vmem:[%s4658_s1 + $0x234] ss:$8 sps:$4 sm:$0xff]  }
  0x44   :  { %v3686_v53 = vld [vmem:[%s4658_s1 + $0x230] ss:$8 sps:$4 sm:$0xff]  }
  0x45   :  { %v634_v55 = vld [vmem:[%s4657_s0 + $0x2b] sm:$0xff]  ;;  %v635_v61 = vld [vmem:[%s4657_s0 + $0x33] sm:$0xff]  ;;  %v636_v62 = vld [vmem:[%s4657_s0 + $0x3b] sm:$0xf] }
  0x46   :  { %220 = vmatpush1.bf16.msra.mxu0 %v3604_v16  ;;  %v439_v16 = vpack.c.bf16 %v432_v13, %v431_v12  ;;  %v828_v6 = vld [vmem:[%s4657_s0 + $0xc] sm:$0xff] }
  0x47   :  { %358 = vmatprep.subr.bf16.mxu0 %v3607_v19  ;;  %v433_v19 = vld [vmem:[%s4657_s0 + $0x12] sm:$0xff] }
  0x48   :  { %v832_v12 = vld [vmem:[%s4657_s0 + $0x2c] sm:$0xff] }
  0x49   :  { %238 = vmatmul.mubr.bf16.vlgmr.msra.gmra.mrb[0].mxu0 %v104_v20  ;;  %v434_v20 = vld [vmem:[%s4657_s0 + $0x1a] sm:$0xff] }
  0x4a   :  { %359 = vmatpush1.bf16.msra.mxu0 %v3605_v21  ;;  %247 = vmatprep.mubr.bf16.mxu0 %v3955_v0  ;;  %v3661_v21 = vld [vmem:[%s4658_s1 + $0x1a4] ss:$8 sps:$4 sm:$0xff]  }
  0x4b   :  { %360 = vmatprep.subr.bf16.mxu0 %v3610_v22  ;;  %v3659_v22 = vld [vmem:[%s4658_s1 + $0x1a0] ss:$8 sps:$4 sm:$0xff]  }
  0x4e   :  { %361 = vmatpush1.bf16.msra.mxu0 %v3608_v23  ;;  %v440_v23 = vpack.c.bf16 %v434_v20, %v433_v19  ;;  %v3707_v19 = vld [vmem:[#allocation4 + $0xa4] ss:$8 sps:$4 sm:$0xff]   ;;  %v3709_v20 = vld [vmem:[#allocation4 + $0xa0] ss:$8 sps:$4 sm:$0xff]  }
  0x4f   :  { %362 = vmatprep.subr.bf16.mxu0 %v3613_v26  ;;  %v435_v26 = vld [vmem:[%s4657_s0 + $0x22] sm:$0xff] }
  0x51   :  { %248 = vmatmul.mubr.bf16.gmra.mrb[4].mxu0 %v105_v27  ;;  %v436_v27 = vld [vmem:[%s4657_s0 + $0x2a] sm:$0xff] }
  0x52   :  { %363 = vmatpush1.bf16.msra.mxu0 %v3611_v28  ;;  %257 = vmatprep.mubr.bf16.mxu0 %v3955_v0  ;;  %v3667_v28 = vld [vmem:[%s4658_s1 + $0x1c4] ss:$8 sps:$4 sm:$0xff]  }
  0x53   :  { %364 = vmatprep.subr.bf16.mxu0 %v3616_v29  ;;  %v3665_v29 = vld [vmem:[%s4658_s1 + $0x1c0] ss:$8 sps:$4 sm:$0xff]  }
  0x56   :  { %365 = vmatpush1.bf16.msra.mxu0 %v3614_v30  ;;  %v441_v30 = vpack.c.bf16 %v436_v27, %v435_v26  ;;  %v3718_v26 = vld [vmem:[#allocation4 + $0xd0] ss:$8 sps:$4 sm:$0xff]   ;;  %v3719_v27 = vld [vmem:[#allocation4 + $0xe4] ss:$8 sps:$4 sm:$0xff]  }
  0x57   :  { %366 = vmatprep.subr.bf16.mxu0 %v3619_v33  ;;  %v437_v33 = vld [vmem:[%s4657_s0 + $0x32] sm:$0xff] }
  0x59   :  { %258 = vmatmul.mubr.bf16.gmra.mrb[8].mxu0 %v106_v34  ;;  %v438_v34 = vld [vmem:[%s4657_s0 + $0x3a] sm:$0xf] }
  0x5a   :  { %367 = vmatpush1.bf16.msra.mxu0 %v3617_v35  ;;  %267 = vmatprep.mubr.bf16.mxu0 %v3955_v0  ;;  %v3673_v35 = vld [vmem:[%s4658_s1 + $0x1e4] ss:$8 sps:$4 sm:$0xff]  }
  0x5b   :  { %368 = vmatprep.subr.bf16.mxu0 %v3622_v36  ;;  %v3671_v36 = vld [vmem:[%s4658_s1 + $0x1e0] ss:$8 sps:$4 sm:$0xff]  }
  0x5e   :  { %369 = vmatpush1.bf16.msra.mxu0 %v3620_v37  ;;  %v442_v37 = vpack.c.bf16 %v438_v34, %v437_v33  ;;  %v1027_v33 = vlaneseq }
  0x5f   :  { %370 = vmatprep.subr.bf16.mxu0 %v3625_v40  ;;  %v629_v40 = vld [vmem:[%s4657_s0 + $0x3] sm:$0xff] }
  0x60   :  { %v4426_v34 = vshrl.u32 %v1027_v33, 7  ;;  %v3725_v33 = vld [vmem:[#allocation4] ss:$8 sps:$4 sm:$0xff]  }
  0x61   :  { %268 = vmatmul.mubr.bf16.gmra.mrb[12].mxu0 %v107_v41  ;;  %v630_v41 = vld [vmem:[%s4657_s0 + $0xb] sm:$0xff] }
  0x62   :  { %371 = vmatpush1.bf16.msra.mxu0 %v3623_v42  ;;  %390 = vmatprep.mubr.bf16.mxu0 %v3955_v0  ;;  %v3679_v42 = vld [vmem:[%s4658_s1 + $0x204] ss:$8 sps:$4 sm:$0xff]  }
  0x63   :  { %372 = vmatprep.subr.bf16.mxu0 %v3628_v43  ;;  %v3677_v43 = vld [vmem:[%s4658_s1 + $0x200] ss:$8 sps:$4 sm:$0xff]  }
  0x66   :  { %373 = vmatpush1.bf16.msra.mxu0 %v3626_v44  ;;  %v637_v44 = vpack.c.bf16 %v630_v41, %v629_v40 }
  0x67   :  { %540 = vmatprep.subr.bf16.mxu0 %v3631_v47  ;;  %v631_v47 = vld [vmem:[%s4657_s0 + $0x13] sm:$0xff] }
  0x69   :  { %391 = vmatmul.mubr.bf16.vlgmr.msra.gmra.mrb[0].mxu0 %v76_v48  ;;  %v632_v48 = vld [vmem:[%s4657_s0 + $0x1b] sm:$0xff] }
  0x6a   :  { %541 = vmatpush1.bf16.msra.mxu0 %v3629_v49  ;;  %400 = vmatprep.mubr.bf16.mxu0 %v3955_v0  ;;  %v3685_v49 = vld [vmem:[%s4658_s1 + $0x224] ss:$8 sps:$4 sm:$0xff]  }
  0x6b   :  { %542 = vmatprep.subr.bf16.mxu0 %v3634_v50  ;;  %v638_v50 = vpack.c.bf16 %v632_v48, %v631_v47 }
  0x6e   :  { %543 = vmatpush1.bf16.msra.mxu0 %v3632_v51  ;;  %v3683_v51 = vld [vmem:[%s4658_s1 + $0x220] ss:$8 sps:$4 sm:$0xff]  }
  0x6f   :  { %544 = vmatprep.subr.bf16.mxu0 %v3637_v54  ;;  %v633_v54 = vld [vmem:[%s4657_s0 + $0x23] sm:$0xff] }
  0x71   :  { %401 = vmatmul.mubr.bf16.gmra.mrb[4].mxu0 %v77_v58  ;;  %v3689_v58 = vld [vmem:[%s4658_s1 + $0x240] ss:$8 sps:$4 sm:$0xff]  }
  0x72   :  { %545 = vmatpush1.bf16.msra.mxu0 %v3635_v57  ;;  %410 = vmatprep.mubr.bf16.mxu0 %v3955_v0  ;;  %v639_v57 = vpack.c.bf16 %v634_v55, %v633_v54 }
  0x73   :  { %546 = vmatprep.subr.bf16.mxu0 %v3640_v59  ;;  %v3694_v59 = vld [vmem:[%s4658_s1 + $0x254] ss:$8 sps:$4 sm:$0xff]  }
  0x76   :  { %547 = vmatpush1.bf16.msra.mxu0 %v3638_v60  ;;  %v3692_v60 = vld [vmem:[%s4658_s1 + $0x250] ss:$8 sps:$4 sm:$0xff]  }
  0x77   :  { %548 = vmatprep.subr.bf16.mxu0 %v3643_v63  ;;  %v3697_v63 = vld [vmem:[%s4658_s1 + $0x264] ss:$8 sps:$4 sm:$0xff]  }
  0x79   :  { %411 = vmatmul.mubr.bf16.gmra.mrb[8].mxu0 %v78_v2  ;;  %v3695_v2 = vld [vmem:[%s4658_s1 + $0x260] ss:$8 sps:$4 sm:$0xff]  }
  0x7a   :  { %549 = vmatpush1.bf16.msra.mxu0 %v3641_v1  ;;  %420 = vmatprep.mubr.bf16.mxu0 %v3955_v0  ;;  %v640_v1 = vpack.c.bf16 %v636_v62, %v635_v61 }
  0x7b   :  { %550 = vmatprep.subr.bf16.mxu0 %v3646_v3  ;;  %v3700_v3 = vld [vmem:[%s4658_s1 + $0x274] ss:$8 sps:$4 sm:$0xff]  }
  0x7e   :  { %551 = vmatpush1.bf16.msra.mxu0 %v3644_v4  ;;  %v3698_v4 = vld [vmem:[%s4658_s1 + $0x270] ss:$8 sps:$4 sm:$0xff]   ;;  %s3958_s1 = smov [#allocation9]  }
  0x7f   :  { %552 = vmatprep.subr.bf16.mxu0 %v3649_v7  ;;  %v835_v7 = vpack.c.bf16 %v828_v6, %v827_v5  ;;  %s2963_s24 = sshll.u32 %s3958_s1, 4  ;;  %s2964_s24 = int_to_ptr.vmem [resolvable:$true] %s2963_s24 }
  0x80   :  { %p3926_p3 = scmp.lt.s32.totalorder %s2964_s24, %s2964_s24 }
  0x81   :  { %421 = vmatmul.mubr.bf16.gmra.mrb[12].mxu0 %v79_v9  ;;  %v830_v9 = vld [vmem:[%s4657_s0 + $0x1c] sm:$0xff] }
  0x82   :  { %553 = vmatpush1.bf16.msra.mxu0 %v3647_v8  ;;  %572 = vmatprep.mubr.bf16.mxu0 %v3955_v0  ;;  %v829_v8 = vld [vmem:[%s4657_s0 + $0x14] sm:$0xff] }
  0x83   :  { %554 = vmatprep.subr.bf16.mxu0 %v3652_v10  ;;  %v836_v10 = vpack.c.bf16 %v830_v9, %v829_v8 }
  0x86   :  { %555 = vmatpush1.bf16.msra.mxu0 %v3650_v11  ;;  %v831_v11 = vld [vmem:[%s4657_s0 + $0x24] sm:$0xff] }
  0x87   :  { %738 = vmatprep.subr.bf16.mxu0 %v3655_v14  ;;  %v837_v13 = vpack.c.bf16 %v832_v12, %v831_v11  ;;  %v833_v14 = vld [vmem:[%s4657_s0 + $0x34] sm:$0xff] }
  0x89   :  { %573 = vmatmul.mubr.bf16.vlgmr.msra.gmra.mrb[0].mxu0 %v439_v16 }
  0x8a   :  { %739 = vmatpush1.bf16.msra.mxu0 %v3653_v15  ;;  %582 = vmatprep.mubr.bf16.mxu0 %v3955_v0  ;;  %v834_v15 = vld [vmem:[%s4657_s0 + $0x3c] sm:$0xf] }
  0x8b   :  { %740 = vmatprep.subr.bf16.mxu0 %v3658_v17  ;;  %v838_v16 = vpack.c.bf16 %v834_v15, %v833_v14  ;;  %v3704_v17 = vld [vmem:[#allocation4 + $0x94] ss:$8 sps:$4 sm:$0xff]  }
  0x8c   :  { %1251 = vmatprep.subr.bf16.mxu1 %v3704_v17 }
  0x8e   :  { %741 = vmatpush1.bf16.msra.mxu0 %v3656_v18  ;;  %v3706_v18 = vld [vmem:[#allocation4 + $0x90] ss:$8 sps:$4 sm:$0xff]  }
  0x8f   :  { %742 = vmatprep.subr.bf16.mxu0 %v3661_v21  ;;  %1252 = vmatpush1.bf16.msra.mxu1 %v3706_v18  ;;  %v3710_v21 = vld [vmem:[#allocation4 + $0xb4] ss:$8 sps:$4 sm:$0xff]  }
  0x90   :  { %1253 = vmatprep.subr.bf16.mxu1 %v3707_v19 }
  0x91   :  { %583 = vmatmul.mubr.bf16.gmra.mrb[4].mxu0 %v440_v23  ;;  %v3713_v23 = vld [vmem:[#allocation4 + $0xc4] ss:$8 sps:$4 sm:$0xff]  }
  0x92   :  { %743 = vmatpush1.bf16.msra.mxu0 %v3659_v22  ;;  %592 = vmatprep.mubr.bf16.mxu0 %v3955_v0  ;;  %v3712_v22 = vld [vmem:[#allocation4 + $0xb0] ss:$8 sps:$4 sm:$0xff]  }
  0x93   :  { %744 = vmatprep.subr.bf16.mxu0 %v3664_v24  ;;  %1254 = vmatpush1.bf16.msra.mxu1 %v3709_v20  ;;  %v3715_v24 = vld [vmem:[#allocation4 + $0xc0] ss:$8 sps:$4 sm:$0xff]  }
  0x94   :  { %1255 = vmatprep.subr.bf16.mxu1 %v3710_v21 }
  0x96   :  { %745 = vmatpush1.bf16.msra.mxu0 %v3662_v25  ;;  %v3716_v25 = vld [vmem:[#allocation4 + $0xd4] ss:$8 sps:$4 sm:$0xff]  }
  0x97   :  { %746 = vmatprep.subr.bf16.mxu0 %v3667_v28  ;;  %1256 = vmatpush1.bf16.msra.mxu1 %v3712_v22  ;;  %v3721_v28 = vld [vmem:[#allocation4 + $0xe0] ss:$8 sps:$4 sm:$0xff]  }
  0x98   :  { %1257 = vmatprep.subr.bf16.mxu1 %v3713_v23 }
  0x99   :  { %593 = vmatmul.mubr.bf16.gmra.mrb[8].mxu0 %v441_v30  ;;  %v3724_v30 = vld [vmem:[#allocation4 + $0xf0] ss:$8 sps:$4 sm:$0xff]  }
  0x9a   :  { %747 = vmatpush1.bf16.msra.mxu0 %v3665_v29  ;;  %602 = vmatprep.mubr.bf16.mxu0 %v3955_v0  ;;  %v3722_v29 = vld [vmem:[#allocation4 + $0xf4] ss:$8 sps:$4 sm:$0xff]  }
  0x9b   :  { %748 = vmatprep.subr.bf16.mxu0 %v3670_v31  ;;  %1258 = vmatpush1.bf16.msra.mxu1 %v3715_v24  ;;  %v3727_v31 = vld [vmem:[#allocation4 + $0x4] ss:$8 sps:$4 sm:$0xff]  }
  0x9c   :  { %1259 = vmatprep.subr.bf16.mxu1 %v3716_v25 }
  0x9e   :  { %749 = vmatpush1.bf16.msra.mxu0 %v3668_v32  ;;  %v3956_v32 = vmov 0.0  }
  0x9f   :  { %750 = vmatprep.subr.bf16.mxu0 %v3673_v35  ;;  %1260 = vmatpush1.bf16.msra.mxu1 %v3718_v26  ;;  %1077 = vst [vmem:[#allocation2 + $0x38] sm:$0xff] %v3956_v32  ;;  %v1029_v35 = vsub.s32 0, %v4426_v34 }
  0xa0   :  { %1261 = vmatprep.subr.bf16.mxu1 %v3719_v27 }
  0xa1   :  { %603 = vmatmul.mubr.bf16.gmra.mrb[12].mxu0 %v442_v37  ;;  %v1033_v37 = vsub.s32 1, %v4426_v34 }
  0xa2   :  { %751 = vmatpush1.bf16.msra.mxu0 %v3671_v36  ;;  %770 = vmatprep.mubr.bf16.mxu0 %v3955_v0  ;;  %v1025_v36 = vld [vmem:[%s4659_s2] sm:$0x3] }
  0xa3   :  { %752 = vmatprep.subr.bf16.mxu0 %v3676_v38  ;;  %1262 = vmatpush1.bf16.msra.mxu1 %v3721_v28  ;;  %v4435_v38 = vrot.slane %v1025_v36, %v1029_v35 }
  0xa4   :  { %1263 = vmatprep.subr.bf16.mxu1 %v3722_v29 }
  0xa6   :  { %753 = vmatpush1.bf16.msra.mxu0 %v3674_v39  ;;  %v4439_v39 = vrot.slane %v1025_v36, %v1033_v37 }
  0xa7   :  { %936 = vmatprep.subr.bf16.mxu0 %v3679_v42  ;;  %1264 = vmatpush1.bf16.msra.mxu1 %v3724_v30 }
  0xa8   :  { %1400 = vmatprep.subr.bf16.mxu1 %v3727_v31 }
  0xa9   :  { %771 = vmatmul.mubr.bf16.vlgmr.msra.gmra.mrb[0].mxu0 %v637_v44 }
  0xaa   :  { %937 = vmatpush1.bf16.msra.mxu0 %v3677_v43  ;;  %780 = vmatprep.mubr.bf16.mxu0 %v3955_v0 }
  0xab   :  { %938 = vmatprep.subr.bf16.mxu0 %v3682_v45 }
  0xae   :  { %939 = vmatpush1.bf16.msra.mxu0 %v3680_v46 }
  0xaf   :  { %940 = vmatprep.subr.bf16.mxu0 %v3685_v49 }
  0xb1   :  { %781 = vmatmul.mubr.bf16.gmra.mrb[4].mxu0 %v638_v50 }
  0xb2   :  { %941 = vmatpush1.bf16.msra.mxu0 %v3683_v51  ;;  %790 = vmatprep.mubr.bf16.mxu0 %v3955_v0 }
  0xb3   :  { %942 = vmatprep.subr.bf16.mxu0 %v3688_v52 }
  0xb6   :  { %943 = vmatpush1.bf16.msra.mxu0 %v3686_v53 }
  0xb7   :  { %944 = vmatprep.subr.bf16.mxu0 %v3691_v56 }
  0xb9   :  { %791 = vmatmul.mubr.bf16.gmra.mrb[8].mxu0 %v639_v57 }
  0xba   :  { %945 = vmatpush1.bf16.msra.mxu0 %v3689_v58  ;;  %800 = vmatprep.mubr.bf16.mxu0 %v3955_v0 }
  0xbb   :  { %946 = vmatprep.subr.bf16.mxu0 %v3694_v59 }
  0xbe   :  { %947 = vmatpush1.bf16.msra.mxu0 %v3692_v60 }
  0xbf   :  { %948 = vmatprep.subr.bf16.mxu0 %v3697_v63 }
  0xc1   :  { %801 = vmatmul.mubr.bf16.gmra.mrb[12].mxu0 %v640_v1 }
  0xc2   :  { %949 = vmatpush1.bf16.msra.mxu0 %v3695_v2  ;;  %968 = vmatprep.mubr.bf16.mxu0 %v3955_v0 }
  0xc3   :  { %950 = vmatprep.subr.bf16.mxu0 %v3700_v3 }
  0xc6   :  { %951 = vmatpush1.bf16.msra.mxu0 %v3698_v4 }
  0xc7   :  { %3319 = vmatprep.subr.bf16.mxu0 %v3956_v32 }
  0xc9   :  { %969 = vmatmul.mubr.bf16.vlgmr.msra.gmra.mrb[0].mxu0 %v835_v7 }
  0xca   :  { %978 = vmatprep.mubr.bf16.mxu0 %v3955_v0 }
  0xd1   :  { %979 = vmatmul.mubr.bf16.gmra.mrb[4].mxu0 %v836_v10 }
  0xd2   :  { %988 = vmatprep.mubr.bf16.mxu0 %v3955_v0 }
  0xd9   :  { %989 = vmatmul.mubr.bf16.gmra.mrb[8].mxu0 %v837_v13 }
  0xda   :  { %998 = vmatprep.mubr.bf16.mxu0 %v3955_v0 }
  0xe1   :  { %999 = vmatmul.mubr.bf16.gmra.mrb[12].mxu0 %v838_v16 }
  0xe2   :  { %3335 = vmatprep.mubr.msk.bf16.mxu0 %vm3957_vm0, %v3956_v32 }
 0x19c   :  { %v970_v40 = vpop.f32.mrb[0].mxu0 }
 0x19d   :  { %v1037_v41 = vadd.f32 %v4435_v38, %v970_v40  ;;  %v972_v42 = vpop.f32.mrb[1].mxu0 }
 0x19e   :  { %v1038_v43 = vadd.f32 %v4439_v39, %v972_v42  ;;  %v974_v44 = vpop.f32.mrb[2].mxu0 }
 0x19f   :  { %v1053_v45 = vmax.f32 %v1037_v41, 0.0  ;;  %v1039_v46 = vadd.f32 %v4435_v38, %v974_v44  ;;  %v976_v47 = vpop.f32.mrb[3].mxu0 }
 0x1a0   :  { %v1054_v48 = vmax.f32 %v1038_v43, 0.0  ;;  %v1040_v49 = vadd.f32 %v4439_v39, %v976_v47  ;;  %v3730_v43 = vld [vmem:[#allocation4 + $0x14] ss:$8 sps:$4 sm:$0xff]  }
 0x1a1   :  { %v1055_v50 = vmax.f32 %v1039_v46, 0.0 }
 0x1a2   :  { %v1069_v51 = vmax.f32 %v1053_v45, %v1054_v48  ;;  %v1056_v52 = vmax.f32 %v1040_v49, 0.0 }
 0x1a4   :  { %1078 = vst [vmem:[#allocation2] sm:$0xff] %v1069_v51  ;;  %v1070_v53 = vmax.f32 %v1055_v50, %v1056_v52  ;;  %v980_v54 = vpop.f32.mrb[4].mxu0  ;;  %v3728_v52 = vld [vmem:[#allocation4 + $0x10] ss:$8 sps:$4 sm:$0xff]  }
 0x1a5   :  { %v1041_v55 = vadd.f32 %v4435_v38, %v980_v54  ;;  %v982_v56 = vpop.f32.mrb[5].mxu0 }
 0x1a6   :  { %1079 = vst [vmem:[#allocation2 + $0x8] sm:$0xff] %v1070_v53  ;;  %v1042_v57 = vadd.f32 %v4439_v39, %v982_v56  ;;  %v984_v58 = vpop.f32.mrb[6].mxu0 }
 0x1a7   :  { %v1057_v59 = vmax.f32 %v1041_v55, 0.0  ;;  %v1043_v60 = vadd.f32 %v4435_v38, %v984_v58  ;;  %v986_v61 = vpop.f32.mrb[7].mxu0 }
 0x1a8   :  { %v1058_v62 = vmax.f32 %v1042_v57, 0.0  ;;  %v1044_v63 = vadd.f32 %v4439_v39, %v986_v61 }
 0x1a9   :  { %v1059_v1 = vmax.f32 %v1043_v60, 0.0 }
 0x1aa   :  { %v1071_v2 = vmax.f32 %v1057_v59, %v1058_v62  ;;  %v1060_v3 = vmax.f32 %v1044_v63, 0.0 }
 0x1ac   :  { %1080 = vst [vmem:[#allocation2 + $0x10] sm:$0xff] %v1071_v2  ;;  %v4449_v4 = vmax.f32 %v1059_v1, %v1060_v3  ;;  %v990_v5 = vpop.f32.mrb[8].mxu0  ;;  %v3731_v1 = vld [vmem:[#allocation4 + $0x20] ss:$8 sps:$4 sm:$0xff]  }
 0x1ad   :  { %v1045_v6 = vadd.f32 %v4435_v38, %v990_v5  ;;  %v992_v7 = vpop.f32.mrb[9].mxu0  ;;  %v1127_v15 = vld [vmem:[#allocation2 + $0x2] sm:$0xff]  ;;  %v3736_v5 = vld [vmem:[#allocation4 + $0x34] ss:$8 sps:$4 sm:$0xff]  }
 0x1ae   :  { %1081 = vst [vmem:[#allocation2 + $0x18] sm:$0xff] %v4449_v4  ;;  %v1046_v8 = vadd.f32 %v4439_v39, %v992_v7  ;;  %v994_v9 = vpop.f32.mrb[10].mxu0  ;;  %v1134_v16 = vld [vmem:[#allocation2 + $0x3] sm:$0xff] }
 0x1af   :  { %v1061_v10 = vmax.f32 %v1045_v6, 0.0  ;;  %v1047_v11 = vadd.f32 %v4435_v38, %v994_v9  ;;  %v996_v12 = vpop.f32.mrb[11].mxu0  ;;  %v1093_v18 = vld [vmem:[#allocation2 + $0x1] sm:$0xff]  ;;  %v1141_v23 = vmax.f32 %v1127_v15, %v1134_v16  ;;  %v3734_v9 = vld [vmem:[#allocation4 + $0x30] ss:$8 sps:$4 sm:$0xff]  }
 0x1b0   :  { %v1062_v13 = vmax.f32 %v1046_v8, 0.0  ;;  %v1048_v14 = vadd.f32 %v4439_v39, %v996_v12  ;;  %v1100_v28 = vmax.f32 %v1069_v51, %v1093_v18 }
 0x1b1   :  { %v1063_v17 = vmax.f32 %v1047_v11, 0.0  ;;  %v3739_v11 = vld [vmem:[#allocation4 + $0x44] ss:$8 sps:$4 sm:$0xff]  }
 0x1b2   :  { %v1073_v19 = vmax.f32 %v1061_v10, %v1062_v13  ;;  %v1064_v20 = vmax.f32 %v1048_v14, 0.0 }
 0x1b3   :  { %v1128_v21 = vld [vmem:[#allocation2 + $0xa] sm:$0xff] }
 0x1b4   :  { %v1135_v22 = vld [vmem:[#allocation2 + $0xb] sm:$0xff]  ;;  %1082 = vst [vmem:[#allocation2 + $0x20] sm:$0xff] %v1073_v19  ;;  %v4456_v25 = vmax.f32 %v1063_v17, %v1064_v20  ;;  %v1000_v26 = vpop.f32.mrb[12].mxu0  ;;  %v3742_v20 = vld [vmem:[#allocation4 + $0x54] ss:$8 sps:$4 sm:$0xff]  }
 0x1b5   :  { %v1094_v24 = vld [vmem:[#allocation2 + $0x9] sm:$0xff]  ;;  %v1142_v27 = vmax.f32 %v1128_v21, %v1135_v22  ;;  %v1049_v30 = vadd.f32 %v4435_v38, %v1000_v26  ;;  %v1002_v31 = vpop.f32.mrb[13].mxu0  ;;  %v1095_v36 = vld [vmem:[#allocation2 + $0x11] sm:$0xff] }
 0x1b6   :  { %v4458_v29 = vmax.f32 %v1070_v53, %v1094_v24  ;;  %1083 = vst [vmem:[#allocation2 + $0x28] sm:$0xff] %v4456_v25  ;;  %v1050_v40 = vadd.f32 %v4439_v39, %v1002_v31  ;;  %v1004_v41 = vpop.f32.mrb[14].mxu0  ;;  %v4467_v48 = vmax.f32 %v1071_v2, %v1095_v36  ;;  %v1129_v53 = vld [vmem:[#allocation2 + $0x12] sm:$0xff]  ;;  %v3737_v17 = vld [vmem:[#allocation4 + $0x40] ss:$8 sps:$4 sm:$0xff]  }
 0x1b7   :  { %v1148_v42 = vpack.c.bf16 %v1142_v27, %v1141_v23  ;;  %v1065_v45 = vmax.f32 %v1049_v30, 0.0  ;;  %v1051_v46 = vadd.f32 %v4435_v38, %v1004_v41  ;;  %v1006_v47 = vpop.f32.mrb[15].mxu0  ;;  %v1136_v54 = vld [vmem:[#allocation2 + $0x13] sm:$0xff]  ;;  %v3733_v38 = vld [vmem:[#allocation4 + $0x24] ss:$8 sps:$4 sm:$0xff]  }
 0x1b8   :  { %v4464_v44 = vpack.c.bf16 %v4458_v29, %v1100_v28  ;;  %v1066_v49 = vmax.f32 %v1050_v40, 0.0  ;;  %v1052_v50 = vadd.f32 %v4439_v39, %v1006_v47  ;;  %v1906_v55 = vpack.c.bf16 %v4467_v48, %v4458_v29  ;;  %v3740_v26 = vld [vmem:[#allocation4 + $0x50] ss:$8 sps:$4 sm:$0xff]   ;;  %v3745_v30 = vld [vmem:[#allocation4 + $0x64] ss:$8 sps:$4 sm:$0xff]  }
 0x1b9   :  { %1282 = vmatmul.mubr.bf16.vlgmr.msra.gmra.mrb[0].mxu1 %v1148_v42  ;;  %v1067_v51 = vmax.f32 %v1051_v46, 0.0  ;;  %v1143_v61 = vmax.f32 %v1129_v53, %v1136_v54  ;;  %v3748_v36 = vld [vmem:[#allocation4 + $0x74] ss:$8 sps:$4 sm:$0xff]   ;;  %v3746_v40 = vld [vmem:[#allocation4 + $0x70] ss:$8 sps:$4 sm:$0xff]   ;;  %v3822_v29 = vld [vmem:[#allocation7] sm:$0xff]  }
 0x1ba   :  { %1401 = vmatpush1.bf16.msra.mxu1 %v3725_v33  ;;  %1291 = vmatprep.mubr.bf16.mxu1 %v3955_v0  ;;  %v1075_v56 = vmax.f32 %v1065_v45, %v1066_v49  ;;  %v1068_v57 = vmax.f32 %v1052_v50, 0.0  ;;  %v3751_v41 = vld [vmem:[#allocation4 + $0x104] ss:$8 sps:$4 sm:$0xff]   ;;  %v3749_v42 = vld [vmem:[#allocation4 + $0x100] ss:$8 sps:$4 sm:$0xff]  }
 0x1bb   :  { %1402 = vmatprep.subr.bf16.mxu1 %v3730_v43  ;;  %v1130_v58 = vld [vmem:[#allocation2 + $0x1a] sm:$0xff]  ;;  %v3757_v46 = vld [vmem:[#allocation4 + $0x124] ss:$8 sps:$4 sm:$0xff]  }
 0x1bc   :  { %v1137_v59 = vld [vmem:[#allocation2 + $0x1b] sm:$0xff]  ;;  %1084 = vst [vmem:[#allocation2 + $0x30] sm:$0xff] %v1075_v56  ;;  %v1076_v39 = vmax.f32 %v1067_v51, %v1068_v57  ;;  %v3763_v51 = vld [vmem:[#allocation4 + $0x144] ss:$8 sps:$4 sm:$0xff]  }
 0x1bd   :  { %v1096_v60 = vld [vmem:[#allocation2 + $0x19] sm:$0xff]  ;;  %v1144_v62 = vmax.f32 %v1130_v58, %v1137_v59  ;;  %v1097_v2 = vld [vmem:[#allocation2 + $0x21] sm:$0xff] }
 0x1be   :  { %v4474_v63 = vmax.f32 %v4449_v4, %v1096_v60  ;;  %1403 = vmatpush1.bf16.msra.mxu1 %v3728_v52  ;;  %1085 = vst [vmem:[#allocation2 + $0x38] sm:$0xf] %v1076_v39  ;;  %v4478_v7 = vmax.f32 %v1073_v19, %v1097_v2  ;;  %v1131_v4 = vld [vmem:[#allocation2 + $0x22] sm:$0xff]  ;;  %v3754_v43 = vld [vmem:[#allocation4 + $0x114] ss:$8 sps:$4 sm:$0xff]   ;;  %v1472_v39 = vld [vmem:[#allocation2 + $0xc] sm:$0xff] }
 0x1bf   :  { %v1149_v3 = vpack.c.bf16 %v1144_v62, %v1143_v61  ;;  %1404 = vmatprep.subr.bf16.mxu1 %v3733_v38  ;;  %v1138_v10 = vld [vmem:[#allocation2 + $0x23] sm:$0xff]  ;;  %v3752_v45 = vld [vmem:[#allocation4 + $0x110] ss:$8 sps:$4 sm:$0xff]   ;;  %v3760_v49 = vld [vmem:[#allocation4 + $0x134] ss:$8 sps:$4 sm:$0xff]  }
 0x1c0   :  { %v1108_v6 = vpack.c.bf16 %v4474_v63, %v4467_v48  ;;  %v1907_v8 = vpack.c.bf16 %v4478_v7, %v4474_v63  ;;  %v1145_v14 = vmax.f32 %v1131_v4, %v1138_v10  ;;  %v3755_v47 = vld [vmem:[#allocation4 + $0x120] ss:$8 sps:$4 sm:$0xff]   ;;  %v3758_v50 = vld [vmem:[#allocation4 + $0x130] ss:$8 sps:$4 sm:$0xff]   ;;  %v3769_v38 = vld [vmem:[#allocation4 + $0x164] ss:$8 sps:$4 sm:$0xff]  }
 0x1c1   :  { %1292 = vmatmul.mubr.bf16.gmra.mrb[4].mxu1 %v1149_v3  ;;  %v3761_v52 = vld [vmem:[#allocation4 + $0x140] ss:$8 sps:$4 sm:$0xff]   ;;  %v3772_v60 = vld [vmem:[#allocation4 + $0x174] ss:$8 sps:$4 sm:$0xff]   ;;  %v3770_v62 = vld [vmem:[#allocation4 + $0x170] ss:$8 sps:$4 sm:$0xff]  }
 0x1c2   :  { %1405 = vmatpush1.bf16.msra.mxu1 %v3731_v1  ;;  %1301 = vmatprep.mubr.bf16.mxu1 %v3955_v0  ;;  %v3767_v58 = vld [vmem:[#allocation4 + $0x160] ss:$8 sps:$4 sm:$0xff]   ;;  %v1479_v61 = vld [vmem:[#allocation2 + $0xd] sm:$0xff] }
 0x1c3   :  { %1406 = vmatprep.subr.bf16.mxu1 %v3736_v5  ;;  %v1132_v12 = vld [vmem:[#allocation2 + $0x2a] sm:$0xff]  ;;  %v1133_v21 = vld [vmem:[#allocation2 + $0x32] sm:$0xf]  ;;  %v1486_v3 = vmax.f32 %v1472_v39, %v1479_v61  ;;  %v1681_v39 = vld [vmem:[#allocation2 + $0x1e] sm:$0xff] }
 0x1c4   :  { %v1139_v13 = vld [vmem:[#allocation2 + $0x2b] sm:$0xff]  ;;  %v1140_v22 = vld [vmem:[#allocation2 + $0x33] sm:$0xf]  ;;  %v1688_v61 = vld [vmem:[#allocation2 + $0x1f] sm:$0xff] }
 0x1c5   :  { %v1146_v15 = vmax.f32 %v1132_v12, %v1139_v13  ;;  %v1098_v16 = vld [vmem:[#allocation2 + $0x29] sm:$0xff]  ;;  %v1897_v24 = vld [vmem:[#allocation2 + $0x31] sm:$0xff]  ;;  %v1147_v28 = vmax.f32 %v1133_v21, %v1140_v22  ;;  %v1481_v12 = vld [vmem:[#allocation2 + $0x1d] sm:$0xff] }
 0x1c6   :  { %1407 = vmatpush1.bf16.msra.mxu1 %v3734_v9  ;;  %v1105_v18 = vmax.f32 %v4456_v25, %v1098_v16  ;;  %v1904_v27 = vmax.f32 %v1075_v56, %v1897_v24  ;;  %v3743_v25 = vld [vmem:[#allocation4 + $0x60] ss:$8 sps:$4 sm:$0xff]   ;;  %v1092_v53 = vld [vmem:[#allocation2 + $0x30] sm:$0xf]  ;;  %v3775_v5 = vld [vmem:[#allocation4 + $0x184] ss:$8 sps:$4 sm:$0xff]  }
 0x1c7   :  { %v1150_v19 = vpack.c.bf16 %v1146_v15, %v1145_v14  ;;  %1408 = vmatprep.subr.bf16.mxu1 %v3739_v11  ;;  %v1151_v33 = vpack.c.bf16 %v1147_v28, %v1147_v28  ;;  %v1099_v54 = vld [vmem:[#allocation2 + $0x31] sm:$0xf]  ;;  %v1471_v1 = vld [vmem:[#allocation2 + $0x4] sm:$0xff]  ;;  %v1474_v11 = vld [vmem:[#allocation2 + $0x1c] sm:$0xff] }
 0x1c8   :  { %v1109_v23 = vpack.c.bf16 %v1105_v18, %v4478_v7  ;;  %v4486_v31 = vpack.c.bf16 %v1904_v27, %v1105_v18  ;;  %v3764_v56 = vld [vmem:[#allocation4 + $0x150] ss:$8 sps:$4 sm:$0xff]   ;;  %v1106_v57 = vmax.f32 %v1092_v53, %v1099_v54  ;;  %v1478_v2 = vld [vmem:[#allocation2 + $0x5] sm:$0xff]  ;;  %v3778_v10 = vld [vmem:[#allocation4 + $0x194] ss:$8 sps:$4 sm:$0xff]   ;;  %v1488_v16 = vmax.f32 %v1474_v11, %v1481_v12 }
 0x1c9   :  { %1302 = vmatmul.mubr.bf16.gmra.mrb[8].mxu1 %v1150_v19  ;;  %v3773_v9 = vld [vmem:[#allocation4 + $0x180] ss:$8 sps:$4 sm:$0xff]   ;;  %v3776_v13 = vld [vmem:[#allocation4 + $0x190] ss:$8 sps:$4 sm:$0xff]   ;;  %v3784_v21 = vld [vmem:[#allocation4 + $0x1b4] ss:$8 sps:$4 sm:$0xff]  }
 0x1ca   :  { %1409 = vmatpush1.bf16.msra.mxu1 %v3737_v17  ;;  %1311 = vmatprep.mubr.bf16.mxu1 %v3955_v0  ;;  %v1110_v59 = vpack.c.bf16 %v1106_v57, %v1106_v57  ;;  %v1473_v14 = vld [vmem:[#allocation2 + $0x14] sm:$0xff]  ;;  %v3781_v17 = vld [vmem:[#allocation4 + $0x1a4] ss:$8 sps:$4 sm:$0xff]   ;;  %v3779_v19 = vld [vmem:[#allocation4 + $0x1a0] ss:$8 sps:$4 sm:$0xff]  }
 0x1cb   :  { %1410 = vmatprep.subr.bf16.mxu1 %v3742_v20  ;;  %v1480_v15 = vld [vmem:[#allocation2 + $0x15] sm:$0xff]  ;;  %v1476_v22 = vld [vmem:[#allocation2 + $0x2c] sm:$0xff] }
 0x1cc   :  { %v1487_v18 = vmax.f32 %v1473_v14, %v1480_v15  ;;  %v3782_v24 = vld [vmem:[#allocation4 + $0x1b0] ss:$8 sps:$4 sm:$0xff]   ;;  %v1482_v27 = vld [vmem:[#allocation2 + $0x25] sm:$0xff] }
 0x1cd   :  { %v1678_v53 = vld [vmem:[#allocation2 + $0x6] sm:$0xff]  ;;  %v1683_v11 = vld [vmem:[#allocation2 + $0x2e] sm:$0xff]  ;;  %v3827_v7 = vld [vmem:[#allocation7 + $0x58] sm:$0xff]  }
 0x1ce   :  { %1411 = vmatpush1.bf16.msra.mxu1 %v3740_v26  ;;  %v1493_v20 = vpack.c.bf16 %v1488_v16, %v1487_v18  ;;  %v1475_v26 = vld [vmem:[#allocation2 + $0x24] sm:$0xff]  ;;  %v1690_v12 = vld [vmem:[#allocation2 + $0x2f] sm:$0xff] }
 0x1cf   :  { %1412 = vmatprep.subr.bf16.mxu1 %v3745_v30  ;;  %v3787_v30 = vld [vmem:[#allocation4 + $0x1c4] ss:$8 sps:$4 sm:$0xff]   ;;  %v1697_v16 = vmax.f32 %v1683_v11, %v1690_v12  ;;  %v3826_v63 = vld [vmem:[#allocation7 + $0x10] sm:$0xff]   ;;  %v2092_v12 = vld [vmem:[%s4661_s4] sm:$0x3] }
 0x1d0   :  { %v1685_v54 = vld [vmem:[#allocation2 + $0x7] sm:$0xff] }
 0x1d1   :  { %1312 = vmatmul.mubr.bf16.gmra.mrb[12].mxu1 %v1151_v33  ;;  %v3785_v33 = vld [vmem:[#allocation4 + $0x1c0] ss:$8 sps:$4 sm:$0xff]   ;;  %v3799_v57 = vld [vmem:[#allocation4 + $0x204] ss:$8 sps:$4 sm:$0xff]  }
 0x1d2   :  { %1413 = vmatpush1.bf16.msra.mxu1 %v3743_v25  ;;  %1432 = vmatprep.mubr.bf16.mxu1 %v3955_v0  ;;  %v1489_v25 = vmax.f32 %v1475_v26, %v1482_v27  ;;  %v1682_v14 = vld [vmem:[#allocation2 + $0x26] sm:$0xff] }
 0x1d3   :  { %1414 = vmatprep.subr.bf16.mxu1 %v3748_v36  ;;  %v1689_v15 = vld [vmem:[#allocation2 + $0x27] sm:$0xff] }
 0x1d4   :  { %v1696_v18 = vmax.f32 %v1682_v14, %v1689_v15  ;;  %v3817_v27 = vld [vmem:[#allocation4 + $0x264] ss:$8 sps:$4 sm:$0xff]   ;;  %v2097_v14 = vrot.slane %v2092_v12, %v1029_v35  ;;  %v2101_v15 = vrot.slane %v2092_v12, %v1033_v37 }
 0x1d5   :  { %v3823_v48 = vld [vmem:[#allocation7 + $0x48] sm:$0xff]  }
 0x1d6   :  { %1415 = vmatpush1.bf16.msra.mxu1 %v3746_v40  ;;  %v3790_v40 = vld [vmem:[#allocation4 + $0x1d4] ss:$8 sps:$4 sm:$0xff]  }
 0x1d7   :  { %1593 = vmatprep.subr.bf16.mxu1 %v3751_v41  ;;  %v1484_v41 = vld [vmem:[#allocation2 + $0x35] sm:$0xf] }
 0x1d9   :  { %1433 = vmatmul.mubr.bf16.vlgmr.msra.gmra.mrb[0].mxu1 %v4464_v44  ;;  %v3766_v44 = vld [vmem:[#allocation4 + $0x154] ss:$8 sps:$4 sm:$0xff]  }
 0x1da   :  { %1594 = vmatpush1.bf16.msra.mxu1 %v3749_v42  ;;  %1442 = vmatprep.mubr.bf16.mxu1 %v3955_v0  ;;  %v3788_v42 = vld [vmem:[#allocation4 + $0x1d0] ss:$8 sps:$4 sm:$0xff]  }
 0x1db   :  { %1595 = vmatprep.subr.bf16.mxu1 %v3754_v43  ;;  %v1477_v43 = vld [vmem:[#allocation2 + $0x34] sm:$0xf] }
 0x1de   :  { %1596 = vmatpush1.bf16.msra.mxu1 %v3752_v45  ;;  %v1491_v45 = vmax.f32 %v1477_v43, %v1484_v41  ;;  %v3821_v43 = vld [vmem:[#allocation7 + $0x40] sm:$0xff]  }
 0x1df   :  { %1597 = vmatprep.subr.bf16.mxu1 %v3757_v46  ;;  %v3793_v46 = vld [vmem:[#allocation4 + $0x1e4] ss:$8 sps:$4 sm:$0xff]   ;;  %3320 = vmatpush3.bf16.msra.mxu0 %v3821_v43 }
 0x1e0   :  { %3321 = vmatprep.subr.bf16.mxu0 %v3956_v32 }
 0x1e1   :  { %1443 = vmatmul.mubr.bf16.gmra.mrb[4].mxu1 %v1108_v6  ;;  %v1485_v6 = vmax.f32 %v1471_v1, %v1478_v2  ;;  %v1680_v1 = vld [vmem:[#allocation2 + $0x16] sm:$0xff] }
 0x1e2   :  { %1598 = vmatpush1.bf16.msra.mxu1 %v3755_v47  ;;  %1452 = vmatprep.mubr.bf16.mxu1 %v3955_v0  ;;  %v3791_v47 = vld [vmem:[#allocation4 + $0x1e0] ss:$8 sps:$4 sm:$0xff]   ;;  %v1687_v2 = vld [vmem:[#allocation2 + $0x17] sm:$0xff] }
 0x1e3   :  { %1599 = vmatprep.subr.bf16.mxu1 %v3760_v49  ;;  %v1492_v4 = vpack.c.bf16 %v1486_v3, %v1485_v6  ;;  %v1495_v49 = vpack.c.bf16 %v1491_v45, %v1491_v45  ;;  %v1695_v3 = vmax.f32 %v1681_v39, %v1688_v61  ;;  %v1694_v6 = vmax.f32 %v1680_v1, %v1687_v2  ;;  %v3829_v45 = vld [vmem:[#allocation7 + $0x60] sm:$0xff]  }
 0x1e4   :  { %3322 = vmatpush3.bf16.msra.mxu0 %v3823_v48 }
 0x1e5   :  { %3323 = vmatprep.subr.bf16.mxu0 %v3956_v32 }
 0x1e6   :  { %1600 = vmatpush1.bf16.msra.mxu1 %v3758_v50  ;;  %v3796_v50 = vld [vmem:[#allocation4 + $0x1f4] ss:$8 sps:$4 sm:$0xff]  }
 0x1e7   :  { %1601 = vmatprep.subr.bf16.mxu1 %v3763_v51  ;;  %v1679_v51 = vld [vmem:[#allocation2 + $0xe] sm:$0xff] }
 0x1e9   :  { %1453 = vmatmul.mubr.bf16.gmra.mrb[8].mxu1 %v1109_v23  ;;  %v1483_v23 = vld [vmem:[#allocation2 + $0x2d] sm:$0xff] }
 0x1ea   :  { %1602 = vmatpush1.bf16.msra.mxu1 %v3761_v52  ;;  %1462 = vmatprep.mubr.bf16.mxu1 %v3955_v0  ;;  %v1490_v28 = vmax.f32 %v1476_v22, %v1483_v23  ;;  %v1686_v52 = vld [vmem:[#allocation2 + $0xf] sm:$0xff]  ;;  %v1691_v23 = vld [vmem:[#allocation2 + $0x37] sm:$0xf] }
 0x1eb   :  { %1603 = vmatprep.subr.bf16.mxu1 %v3766_v44  ;;  %v3794_v44 = vld [vmem:[#allocation4 + $0x1f0] ss:$8 sps:$4 sm:$0xff]  }
 0x1ec   :  { %v1494_v36 = vpack.c.bf16 %v1490_v28, %v1489_v25  ;;  %v1684_v22 = vld [vmem:[#allocation2 + $0x36] sm:$0xf]  ;;  %v3815_v28 = vld [vmem:[#allocation4 + $0x260] ss:$8 sps:$4 sm:$0xff]  }
 0x1ed   :  { %v1698_v26 = vmax.f32 %v1684_v22, %v1691_v23  ;;  %v3820_v25 = vld [vmem:[#allocation4 + $0x274] ss:$8 sps:$4 sm:$0xff]  }
 0x1ee   :  { %1604 = vmatpush1.bf16.msra.mxu1 %v3764_v56  ;;  %v1693_v56 = vmax.f32 %v1679_v51, %v1686_v52  ;;  %v3831_v51 = vld [vmem:[#allocation7 + $0x68] sm:$0xff]  }
 0x1ef   :  { %1605 = vmatprep.subr.bf16.mxu1 %v3769_v38  ;;  %v1692_v38 = vmax.f32 %v1678_v53, %v1685_v54  ;;  %v3832_v52 = vld [vmem:[#allocation7 + $0x28] sm:$0xff]   ;;  %v3834_v53 = vld [vmem:[#allocation7 + $0x30] sm:$0xff]   ;;  %v3835_v54 = vld [vmem:[#allocation7 + $0x78] sm:$0xff]  }
 0x1f1   :  { %1463 = vmatmul.mubr.bf16.gmra.mrb[16].mxu1 %v1110_v59  ;;  %v1699_v59 = vpack.c.bf16 %v1693_v56, %v1692_v38  ;;  %v3836_v56 = vld [vmem:[#allocation7 + $0x38] sm:$0xff]  }
 0x1f2   :  { %1606 = vmatpush1.bf16.msra.mxu1 %v3767_v58  ;;  %1625 = vmatprep.mubr.bf16.mxu1 %v3955_v0  ;;  %v3797_v58 = vld [vmem:[#allocation4 + $0x200] ss:$8 sps:$4 sm:$0xff]  }
 0x1f3   :  { %1607 = vmatprep.subr.bf16.mxu1 %v3772_v60  ;;  %v3802_v60 = vld [vmem:[#allocation4 + $0x214] ss:$8 sps:$4 sm:$0xff]  }
 0x1f6   :  { %1608 = vmatpush1.bf16.msra.mxu1 %v3770_v62  ;;  %v3800_v62 = vld [vmem:[#allocation4 + $0x210] ss:$8 sps:$4 sm:$0xff]  }
 0x1f7   :  { %1800 = vmatprep.subr.bf16.mxu1 %v3775_v5  ;;  %v3805_v5 = vld [vmem:[#allocation4 + $0x224] ss:$8 sps:$4 sm:$0xff]  }
 0x1f9   :  { %1626 = vmatmul.mubr.bf16.vlgmr.msra.gmra.mrb[0].mxu1 %v1492_v4  ;;  %v1700_v4 = vpack.c.bf16 %v1695_v3, %v1694_v6 }
 0x1fa   :  { %1801 = vmatpush1.bf16.msra.mxu1 %v3773_v9  ;;  %1635 = vmatprep.mubr.bf16.mxu1 %v3955_v0  ;;  %v3803_v9 = vld [vmem:[#allocation4 + $0x220] ss:$8 sps:$4 sm:$0xff]  }
 0x1fb   :  { %1802 = vmatprep.subr.bf16.mxu1 %v3778_v10  ;;  %v3808_v10 = vld [vmem:[#allocation4 + $0x234] ss:$8 sps:$4 sm:$0xff]  }
 0x1fe   :  { %1803 = vmatpush1.bf16.msra.mxu1 %v3776_v13  ;;  %v3806_v13 = vld [vmem:[#allocation4 + $0x230] ss:$8 sps:$4 sm:$0xff]  }
 0x1ff   :  { %1804 = vmatprep.subr.bf16.mxu1 %v3781_v17  ;;  %v3811_v17 = vld [vmem:[#allocation4 + $0x244] ss:$8 sps:$4 sm:$0xff]  }
 0x201   :  { %1636 = vmatmul.mubr.bf16.gmra.mrb[4].mxu1 %v1493_v20  ;;  %v1701_v20 = vpack.c.bf16 %v1697_v16, %v1696_v18 }
 0x202   :  { %1805 = vmatpush1.bf16.msra.mxu1 %v3779_v19  ;;  %1645 = vmatprep.mubr.bf16.mxu1 %v3955_v0  ;;  %v3809_v19 = vld [vmem:[#allocation4 + $0x240] ss:$8 sps:$4 sm:$0xff]  }
 0x203   :  { %1806 = vmatprep.subr.bf16.mxu1 %v3784_v21  ;;  %v3814_v21 = vld [vmem:[#allocation4 + $0x254] ss:$8 sps:$4 sm:$0xff]  }
 0x206   :  { %1807 = vmatpush1.bf16.msra.mxu1 %v3782_v24  ;;  %v3812_v24 = vld [vmem:[#allocation4 + $0x250] ss:$8 sps:$4 sm:$0xff]  }
 0x207   :  { %1808 = vmatprep.subr.bf16.mxu1 %v3787_v30  ;;  %v1702_v30 = vpack.c.bf16 %v1698_v26, %v1698_v26 }
 0x209   :  { %1646 = vmatmul.mubr.bf16.gmra.mrb[8].mxu1 %v1494_v36  ;;  %v1891_v36 = vld [vmem:[#allocation2 + $0x38] sm:$0xf] }
 0x20a   :  { %1809 = vmatpush1.bf16.msra.mxu1 %v3785_v33  ;;  %1655 = vmatprep.mubr.bf16.mxu1 %v3955_v0  ;;  %v3818_v33 = vld [vmem:[#allocation4 + $0x270] ss:$8 sps:$4 sm:$0xff]  }
 0x20b   :  { %1810 = vmatprep.subr.bf16.mxu1 %v3790_v40  ;;  %v1898_v40 = vld [vmem:[#allocation2 + $0x39] sm:$0xf] }
 0x20c   :  { %v1905_v41 = vmax.f32 %v1891_v36, %v1898_v40 }
 0x20e   :  { %1811 = vmatpush1.bf16.msra.mxu1 %v3788_v42  ;;  %v1909_v42 = vpack.c.bf16 %v1905_v41, %v1905_v41 }
 0x20f   :  { %1812 = vmatprep.subr.bf16.mxu1 %v3793_v46  ;;  %v3830_v46 = vld [vmem:[#allocation7 + $0x20] sm:$0xff]  }
 0x211   :  { %1656 = vmatmul.mubr.bf16.gmra.mrb[20].mxu1 %v1495_v49 }
 0x212   :  { %1813 = vmatpush1.bf16.msra.mxu1 %v3791_v47  ;;  %1832 = vmatprep.mubr.bf16.mxu1 %v3955_v0 }
 0x213   :  { %1814 = vmatprep.subr.bf16.mxu1 %v3796_v50 }
 0x216   :  { %1815 = vmatpush1.bf16.msra.mxu1 %v3794_v44  ;;  %v3833_v44 = vld [vmem:[#allocation7 + $0x70] sm:$0xff]  }
 0x217   :  { %2007 = vmatprep.subr.bf16.mxu1 %v3799_v57 }
 0x219   :  { %1833 = vmatmul.mubr.bf16.vlgmr.msra.gmra.mrb[0].mxu1 %v1699_v59 }
 0x21a   :  { %2008 = vmatpush1.bf16.msra.mxu1 %v3797_v58  ;;  %1842 = vmatprep.mubr.bf16.mxu1 %v3955_v0 }
 0x21b   :  { %2009 = vmatprep.subr.bf16.mxu1 %v3802_v60 }
 0x21e   :  { %2010 = vmatpush1.bf16.msra.mxu1 %v3800_v62 }
 0x21f   :  { %2011 = vmatprep.subr.bf16.mxu1 %v3805_v5 }
 0x221   :  { %1843 = vmatmul.mubr.bf16.gmra.mrb[4].mxu1 %v1700_v4 }
 0x222   :  { %2012 = vmatpush1.bf16.msra.mxu1 %v3803_v9  ;;  %1852 = vmatprep.mubr.bf16.mxu1 %v3955_v0 }
 0x223   :  { %2013 = vmatprep.subr.bf16.mxu1 %v3808_v10 }
 0x226   :  { %2014 = vmatpush1.bf16.msra.mxu1 %v3806_v13 }
 0x227   :  { %2015 = vmatprep.subr.bf16.mxu1 %v3811_v17 }
 0x229   :  { %1853 = vmatmul.mubr.bf16.gmra.mrb[8].mxu1 %v1701_v20 }
 0x22a   :  { %2016 = vmatpush1.bf16.msra.mxu1 %v3809_v19  ;;  %1862 = vmatprep.mubr.bf16.mxu1 %v3955_v0 }
 0x22b   :  { %2017 = vmatprep.subr.bf16.mxu1 %v3814_v21 }
 0x22e   :  { %2018 = vmatpush1.bf16.msra.mxu1 %v3812_v24 }
 0x22f   :  { %2019 = vmatprep.subr.bf16.mxu1 %v3817_v27 }
 0x231   :  { %1863 = vmatmul.mubr.bf16.gmra.mrb[24].mxu1 %v1702_v30 }
 0x232   :  { %2020 = vmatpush1.bf16.msra.mxu1 %v3815_v28  ;;  %2039 = vmatprep.mubr.bf16.mxu1 %v3955_v0 }
 0x233   :  { %2021 = vmatprep.subr.bf16.mxu1 %v3820_v25 }
 0x236   :  { %2022 = vmatpush1.bf16.msra.mxu1 %v3818_v33 }
 0x237   :  { %3339 = vmatprep.subr.bf16.mxu1 %v3956_v32 }
 0x239   :  { %2040 = vmatmul.mubr.bf16.vlgmr.msra.gmra.mrb[0].mxu1 %v1906_v55  ;;  %v3824_v55 = vld [vmem:[#allocation7 + $0x8] sm:$0xff]  }
 0x23a   :  { %2049 = vmatprep.mubr.bf16.mxu1 %v3955_v0  ;;  %3340 = vmatpush3.bf16.msra.mxu1 %v3822_v29 }
 0x23b   :  { %3341 = vmatprep.subr.bf16.mxu1 %v3956_v32 }
 0x23e   :  { %3342 = vmatpush3.bf16.msra.mxu1 %v3824_v55 }
 0x23f   :  { %3343 = vmatprep.subr.bf16.mxu1 %v3956_v32 }
 0x241   :  { %2050 = vmatmul.mubr.bf16.gmra.mrb[4].mxu1 %v1907_v8  ;;  %v3828_v8 = vld [vmem:[#allocation7 + $0x18] sm:$0xff]  }
 0x242   :  { %2059 = vmatprep.mubr.bf16.mxu1 %v3955_v0  ;;  %3344 = vmatpush3.bf16.msra.mxu1 %v3826_v63 }
 0x243   :  { %3345 = vmatprep.subr.bf16.mxu1 %v3956_v32 }
 0x246   :  { %3346 = vmatpush3.bf16.msra.mxu1 %v3828_v8 }
 0x247   :  { %3347 = vmatprep.subr.bf16.mxu1 %v3956_v32 }
 0x249   :  { %2060 = vmatmul.mubr.bf16.gmra.mrb[8].mxu1 %v4486_v31 }
 0x24a   :  { %2069 = vmatprep.mubr.bf16.mxu1 %v3955_v0  ;;  %v3825_v0 = vld [vmem:[#allocation7 + $0x50] sm:$0xff]   ;;  %3348 = vmatpush3.bf16.msra.mxu1 %v3830_v46 }
 0x24b   :  { %3324 = vmatpush3.bf16.msra.mxu0 %v3825_v0  ;;  %3349 = vmatprep.subr.bf16.mxu1 %v3956_v32 }
 0x24c   :  { %3325 = vmatprep.subr.bf16.mxu0 %v3956_v32 }
 0x24e   :  { %3350 = vmatpush3.bf16.msra.mxu1 %v3832_v52 }
 0x24f   :  { %3326 = vmatpush3.bf16.msra.mxu0 %v3827_v7  ;;  %3351 = vmatprep.subr.bf16.mxu1 %v3956_v32 }
 0x250   :  { %3327 = vmatprep.subr.bf16.mxu0 %v3956_v32 }
 0x251   :  { %2070 = vmatmul.mubr.bf16.gmra.mrb[28].mxu1 %v1909_v42 }
 0x252   :  { %3352 = vmatpush3.bf16.msra.mxu1 %v3834_v53  ;;  %3355 = vmatprep.mubr.msk.bf16.mxu1 %vm3957_vm0, %v3956_v32 }
 0x253   :  { %3328 = vmatpush3.bf16.msra.mxu0 %v3829_v45  ;;  %3353 = vmatprep.subr.bf16.mxu1 %v3956_v32 }
 0x254   :  { %3329 = vmatprep.subr.bf16.mxu0 %v3956_v32 }
 0x256   :  { %3354 = vmatpush3.bf16.msra.mxu1 %v3836_v56 }
 0x257   :  { %3330 = vmatpush3.bf16.msra.mxu0 %v3831_v51  ;;  %3379 = vmatprep.subr.bf16.mxu1 %v3956_v32 }
 0x258   :  { %3331 = vmatprep.subr.bf16.mxu0 %v3956_v32 }
 0x25b   :  { %3332 = vmatpush3.bf16.msra.mxu0 %v3833_v44 }
 0x25c   :  { %3333 = vmatprep.subr.bf16.mxu0 %v3956_v32 }
 0x25f   :  { %3334 = vmatpush3.bf16.msra.mxu0 %v3835_v54 }
 0x260   :  { %3359 = vmatprep.subr.bf16.mxu0 %v3956_v32 }
 0x2a4   :  { %v1313_v31 = vpop.f32.mrb[12].mxu1 }
 0x2a5   :  { %v1315_v47 = vpop.f32.mrb[13].mxu1 }
 0x2a6   :  { %v1317_v49 = vpop.f32.mrb[14].mxu1 }
 0x2a7   :  { %v1318_v50 = vpop.f32.mrb[15].mxu1 }
 0x2c4   :  { %v1464_v57 = vpop.f32.mrb[16].mxu1 }
 0x2c5   :  { %v1465_v38 = vadd.f32 %v1464_v57, %v1313_v31  ;;  %v1466_v58 = vpop.f32.mrb[17].mxu1 }
 0x2c6   :  { %v1467_v59 = vadd.f32 %v1466_v58, %v1315_v47  ;;  %v1468_v60 = vpop.f32.mrb[18].mxu1 }
 0x2c7   :  { %v1469_v39 = vpop.f32.mrb[19].mxu1 }
 0x2e4   :  { %v1657_v61 = vpop.f32.mrb[20].mxu1 }
 0x2e5   :  { %v1676_v62 = vadd.f32 %v1657_v61, %v1465_v38  ;;  %v1659_v1 = vpop.f32.mrb[21].mxu1 }
 0x2e6   :  { %v1677_v2 = vadd.f32 %v1659_v1, %v1467_v59  ;;  %v1661_v3 = vpop.f32.mrb[22].mxu1 }
 0x2e7   :  { %v1662_v5 = vpop.f32.mrb[23].mxu1 }
 0x304   :  { %v1864_v6 = vpop.f32.mrb[24].mxu1 }
 0x305   :  { %v1883_v9 = vadd.f32 %v1864_v6, %v1676_v62  ;;  %v1866_v4 = vpop.f32.mrb[25].mxu1 }
 0x306   :  { %v1884_v10 = vadd.f32 %v1866_v4, %v1677_v2  ;;  %v1868_v11 = vpop.f32.mrb[26].mxu1 }
 0x307   :  { %v1869_v13 = vpop.f32.mrb[27].mxu1 }
 0x30c   :  { %v2041_v16 = vpop.f32.mrb[0].mxu1 }
 0x30d   :  { %v2104_v17 = vadd.f32 %v2097_v14, %v2041_v16  ;;  %v2043_v18 = vpop.f32.mrb[1].mxu1  ;;  %v3837_v16 = vld [vmem:[#allocation7 + $0x80] sm:$0xff]  }
 0x30e   :  { %v2105_v19 = vadd.f32 %v2101_v15, %v2043_v18  ;;  %v2045_v20 = vpop.f32.mrb[2].mxu1 }
 0x30f   :  { %v2118_v21 = vmax.f32 %v2104_v17, 0.0  ;;  %v2106_v22 = vadd.f32 %v2097_v14, %v2045_v20  ;;  %v2047_v23 = vpop.f32.mrb[3].mxu1  ;;  %v3838_v17 = vld [vmem:[#allocation7 + $0xc0] sm:$0xff]   ;;  %v3840_v20 = vld [vmem:[#allocation7 + $0xc8] sm:$0xff]  }
 0x310   :  { %v2119_v24 = vmax.f32 %v2105_v19, 0.0  ;;  %v2107_v26 = vadd.f32 %v2101_v15, %v2047_v23  ;;  %v3839_v19 = vld [vmem:[#allocation7 + $0x88] sm:$0xff]   ;;  %v3843_v23 = vld [vmem:[#allocation7 + $0x98] sm:$0xff]  }
 0x311   :  { %v2120_v27 = vmax.f32 %v2106_v22, 0.0  ;;  %v3842_v22 = vld [vmem:[#allocation7 + $0xd0] sm:$0xff]  }
 0x312   :  { %v2132_v28 = vmax.f32 %v2118_v21, %v2119_v24  ;;  %v2121_v30 = vmax.f32 %v2107_v26, 0.0  ;;  %v3841_v21 = vld [vmem:[#allocation7 + $0x90] sm:$0xff]   ;;  %v3844_v24 = vld [vmem:[#allocation7 + $0xd8] sm:$0xff]   ;;  %v3845_v26 = vld [vmem:[#allocation7 + $0xa0] sm:$0xff]  }
 0x314   :  { %2139 = vst [vmem:[#allocation3] sm:$0xff] %v2132_v28  ;;  %v2133_v25 = vmax.f32 %v2120_v27, %v2121_v30  ;;  %v2051_v33 = vpop.f32.mrb[4].mxu1  ;;  %v3846_v27 = vld [vmem:[#allocation7 + $0xe0] sm:$0xff]   ;;  %v3847_v28 = vld [vmem:[#allocation7 + $0xa8] sm:$0xff]  }
 0x315   :  { %v2108_v35 = vadd.f32 %v2097_v14, %v2051_v33  ;;  %v2053_v36 = vpop.f32.mrb[5].mxu1  ;;  %v3848_v30 = vld [vmem:[#allocation7 + $0xe8] sm:$0xff]  }
 0x316   :  { %2140 = vst [vmem:[#allocation3 + $0x8] sm:$0xff] %v2133_v25  ;;  %v2109_v34 = vadd.f32 %v2101_v15, %v2053_v36  ;;  %v2055_v37 = vpop.f32.mrb[6].mxu1  ;;  %v3849_v25 = vld [vmem:[#allocation7 + $0xb0] sm:$0xff]  }
 0x317   :  { %v2122_v40 = vmax.f32 %v2108_v35, 0.0  ;;  %v2057_v41 = vpop.f32.mrb[7].mxu1  ;;  %v3850_v36 = vld [vmem:[#allocation7 + $0xf0] sm:$0xff]  }
 0x318   :  { %v2123_v42 = vmax.f32 %v2109_v34, 0.0 }
 0x31a   :  { %v2134_v43 = vmax.f32 %v2122_v40, %v2123_v42 }
 0x31b   :  { %v2172_v60 = vld [vmem:[#allocation3 + $0x4] ss:$32 sm:$0x1]  ;;  %v2176_v39 = vld [vmem:[#allocation3 + $0x6] ss:$32 sm:$0x1] }
 0x31c   :  { %2141 = vst [vmem:[#allocation3 + $0x10] sm:$0xff] %v2134_v43  ;;  %v2061_v29 = vpop.f32.mrb[8].mxu1  ;;  %v2146_v62 = vld [vmem:[#allocation3] ss:$32 sm:$0x1] }
 0x31d   :  { %v2112_v48 = vadd.f32 %v2097_v14, %v2061_v29  ;;  %v2063_v55 = vpop.f32.mrb[9].mxu1  ;;  %v2150_v1 = vld [vmem:[#allocation3 + $0x2] ss:$32 sm:$0x1] }
 0x31e   :  { %v2113_v0 = vadd.f32 %v2101_v15, %v2063_v55  ;;  %v2065_v63 = vpop.f32.mrb[10].mxu1  ;;  %v2375_v40 = vld [vmem:[#allocation3 + $0x8] ss:$32 sm:$0x1] }
 0x31f   :  { %v2126_v7 = vmax.f32 %v2112_v48, 0.0  ;;  %v2114_v8 = vadd.f32 %v2097_v14, %v2065_v63  ;;  %v2067_v31 = vpop.f32.mrb[11].mxu1  ;;  %v2379_v41 = vld [vmem:[#allocation3 + $0xa] ss:$32 sm:$0x1]  ;;  %v3851_v63 = vld [vmem:[#allocation7 + $0xb8] sm:$0xff]  }
 0x320   :  { %v2127_v45 = vmax.f32 %v2113_v0, 0.0  ;;  %v2115_v46 = vadd.f32 %v2101_v15, %v2067_v31  ;;  %v2491_v29 = vld [vmem:[#allocation3 + $0xc] ss:$32 sm:$0x1] }
 0x321   :  { %v2128_v47 = vmax.f32 %v2114_v8, 0.0  ;;  %v2495_v48 = vld [vmem:[#allocation3 + $0xe] ss:$32 sm:$0x1] }
 0x322   :  { %v2136_v49 = vmax.f32 %v2126_v7, %v2127_v45  ;;  %v2129_v50 = vmax.f32 %v2115_v46, 0.0  ;;  %v3852_v7 = vld [vmem:[#allocation7 + $0xf8] sm:$0xff]   ;;  %v3853_v45 = vld [vmem:[#allocation7 + $0x100] sm:$0xff]  }
 0x324   :  { %2143 = vst [vmem:[#allocation3 + $0x20] sm:$0xff] %v2136_v49  ;;  %v2137_v51 = vmax.f32 %v2128_v47, %v2129_v50  ;;  %v2071_v52 = vpop.f32.mrb[28].mxu1  ;;  %v3854_v49 = vld [vmem:[#allocation7 + $0x108] sm:$0xff]   ;;  %v3855_v50 = vld [vmem:[#allocation7 + $0x110] sm:$0xff]  }
 0x325   :  { %v2090_v44 = vadd.f32 %v2071_v52, %v1883_v9  ;;  %v2073_v53 = vpop.f32.mrb[29].mxu1  ;;  %v3857_v52 = vld [vmem:[#allocation7 + $0x120] sm:$0xff]  }
 0x326   :  { %2144 = vst [vmem:[#allocation3 + $0x28] sm:$0xff] %v2137_v51  ;;  %v2091_v54 = vadd.f32 %v2073_v53, %v1884_v10  ;;  %v2075_v56 = vpop.f32.mrb[30].mxu1  ;;  %v3856_v51 = vld [vmem:[#allocation7 + $0x118] sm:$0xff]  }
 0x327   :  { %v2116_v57 = vadd.f32 %v2097_v14, %v2090_v44  ;;  %v2076_v38 = vpop.f32.mrb[31].mxu1  ;;  %v3858_v44 = vld [vmem:[#allocation7 + $0x128] sm:$0xff]   ;;  %v3859_v56 = vld [vmem:[#allocation7 + $0x130] sm:$0xff]  }
 0x328   :  { %v2117_v58 = vadd.f32 %v2101_v15, %v2091_v54  ;;  %v2611_v38 = vld [vmem:[#allocation3 + $0x12] ss:$32 sm:$0x1] }
 0x329   :  { %v2130_v59 = vmax.f32 %v2116_v57, 0.0  ;;  %v2607_v57 = vld [vmem:[#allocation3 + $0x10] ss:$32 sm:$0x1] }
 0x32a   :  { %v2131_v61 = vmax.f32 %v2117_v58, 0.0 }
 0x32b   :  { %v2173_v2 = vld [vmem:[#allocation3 + $0x4] ss:$32 sm:$0x2]  ;;  %v2177_v3 = vld [vmem:[#allocation3 + $0x6] ss:$32 sm:$0x2] }
 0x32c   :  { %v2138_v5 = vmax.f32 %v2130_v59, %v2131_v61  ;;  %v2174_v6 = vor.u32 %v2173_v2, %v2172_v60  ;;  %v2178_v4 = vor.u32 %v2177_v3, %v2176_v39  ;;  %v2147_v11 = vld [vmem:[#allocation3] ss:$32 sm:$0x2]  ;;  %v2151_v9 = vld [vmem:[#allocation3 + $0x2] ss:$32 sm:$0x2] }
 0x32d   :  { %v2148_v12 = vor.u32 %v2147_v11, %v2146_v62  ;;  %v2152_v13 = vor.u32 %v2151_v9, %v2150_v1  ;;  %v2376_v33 = vld [vmem:[#allocation3 + $0x8] ss:$32 sm:$0x2]  ;;  %v2380_v35 = vld [vmem:[#allocation3 + $0xa] ss:$32 sm:$0x2] }
 0x32e   :  { %2145 = vst [vmem:[#allocation3 + $0x30] sm:$0xf] %v2138_v5  ;;  %v2179_v10 = vmax.f32 %v2174_v6, %v2178_v4  ;;  %v2492_v34 = vld [vmem:[#allocation3 + $0xc] ss:$32 sm:$0x2]  ;;  %v2377_v42 = vor.u32 %v2376_v33, %v2375_v40  ;;  %v2381_v43 = vor.u32 %v2380_v35, %v2379_v41  ;;  %v3860_v60 = vld [vmem:[#allocation7 + $0x138] sm:$0xff]  }
 0x32f   :  { %v2153_v14 = vmax.f32 %v2148_v12, %v2152_v13  ;;  %v2496_v37 = vld [vmem:[#allocation3 + $0xe] ss:$32 sm:$0x2]  ;;  %v2493_v55 = vor.u32 %v2492_v34, %v2491_v29  ;;  %v3861_v62 = vld [vmem:[%s4664_s7] sm:$0xff]   ;;  %v3863_v2 = vld [vmem:[%s4664_s7 + $0x10] sm:$0xff]  }
 0x330   :  { %v2180_v15 = vpack.c.bf16 %v2179_v10, %v2179_v10  ;;  %v2497_v0 = vor.u32 %v2496_v37, %v2495_v48  ;;  %v2382_v8 = vmax.f32 %v2377_v42, %v2381_v43  ;;  %v3862_v1 = vld [vmem:[%s4664_s7 + $0x8] sm:$0xff]   ;;  %v3864_v3 = vld [vmem:[%s4664_s7 + $0x18] sm:$0xff]   ;;  %v3865_v5 = vld [vmem:[%s4664_s7 + $0x20] sm:$0xff]  }
 0x331   :  { %v2154_v18 = vpack.c.bf16 %v2153_v14, %v2153_v14  ;;  %v3866_v6 = vld [vmem:[%s4664_s7 + $0x28] sm:$0xff]   ;;  %v3867_v4 = vld [vmem:[%s4664_s7 + $0x30] sm:$0xff]   ;;  %v3868_v11 = vld [vmem:[%s4664_s7 + $0x38] sm:$0xff]  }
 0x332   :  { %3336 = vmatmul.mubr.bf16.vlgmr.msra.gmra.mrb[16].mxu0 %v2180_v15  ;;  %v2498_v31 = vmax.f32 %v2493_v55, %v2497_v0  ;;  %v2383_v46 = vpack.c.bf16 %v2382_v8, %v2382_v8  ;;  %v3869_v9 = vld [vmem:[%s4666_s9] sm:$0xff]   ;;  %v3870_v12 = vld [vmem:[%s4666_s9 + $0x8] sm:$0xff]   ;;  %v3871_v13 = vld [vmem:[%s4666_s9 + $0x10] sm:$0xff]  }
 0x333   :  { %3356 = vmatmul.mubr.bf16.vlgmr.msra.gmra.mrb[32].mxu1 %v2154_v18  ;;  %3360 = vmatpush3.bf16.msra.mxu0 %v3837_v16  ;;  %v3872_v10 = vld [vmem:[%s4666_s9 + $0x18] sm:$0xff]   ;;  %v3873_v14 = vld [vmem:[%s4666_s9 + $0x20] sm:$0xff]   ;;  %v3874_v16 = vld [vmem:[%s4666_s9 + $0x28] sm:$0xff]  }
 0x334   :  { %3380 = vmatpush3.bf16.msra.mxu1 %v3838_v17  ;;  %3361 = vmatprep.subr.bf16.mxu0 %v3956_v32  ;;  %v2499_v47 = vpack.c.bf16 %v2498_v31, %v2498_v31  ;;  %v3237_v41 = vld [vmem:[%s4663_s6] ss:$0 sm:$0xff]  ;;  %v3876_v8 = vld [vmem:[%s4666_s9 + $0x38] sm:$0xff]  }
 0x335   :  { %3381 = vmatprep.subr.bf16.mxu1 %v3956_v32  ;;  %3375 = vmatprep.mubr.msk.bf16.mxu0 %vm3957_vm0, %v3956_v32  ;;  %v2608_v53 = vld [vmem:[#allocation3 + $0x10] ss:$32 sm:$0x2]  ;;  %v2612_v54 = vld [vmem:[#allocation3 + $0x12] ss:$32 sm:$0x2] }
 0x336   :  { %3395 = vmatprep.mubr.msk.bf16.mxu1 %vm3957_vm0, %v3956_v32  ;;  %v2609_v58 = vor.u32 %v2608_v53, %v2607_v57  ;;  %v2613_v59 = vor.u32 %v2612_v54, %v2611_v38  ;;  %v3238_v31 = vld [vmem:[%s4665_s8] ss:$0 sm:$0xff]  ;;  %s3921_s8 = scalar_lea.vmem %s2964_s24, 32 }
 0x337   :  { %3362 = vmatpush3.bf16.msra.mxu0 %v3839_v19  ;;  %p3922_p2 = scmp.ne.s32.totalorder %s2964_s24, %s3921_s8  ;;  %p3927_p4 = scmp.lt.s32.totalorder %s3921_s8, %s3921_s8 }
 0x338   :  { %3382 = vmatpush3.bf16.msra.mxu1 %v3840_v20  ;;  %3363 = vmatprep.subr.bf16.mxu0 %v3956_v32  ;;  %v2614_v39 = vmax.f32 %v2609_v58, %v2613_v59 }
 0x339   :  { %3383 = vmatprep.subr.bf16.mxu1 %v3956_v32  ;;  %p3928_p5 = por %p3927_p4, %p3926_p3 }
 0x33a   :  { %v2615_v61 = vpack.c.bf16 %v2614_v39, %v2614_v39 }
 0x33b   :  { %3364 = vmatpush3.bf16.msra.mxu0 %v3841_v21  ;;  %p3929_p6 = pnand %p3928_p5, %p3922_p2 }
 0x33c   :  { %3384 = vmatpush3.bf16.msra.mxu1 %v3842_v22  ;;  %3365 = vmatprep.subr.bf16.mxu0 %v3956_v32 }
 0x33d   :  { %3385 = vmatprep.subr.bf16.mxu1 %v3956_v32 }
 0x33f   :  { %3366 = vmatpush3.bf16.msra.mxu0 %v3843_v23 }
 0x340   :  { %3386 = vmatpush3.bf16.msra.mxu1 %v3844_v24  ;;  %3367 = vmatprep.subr.bf16.mxu0 %v3956_v32 }
 0x341   :  { %3387 = vmatprep.subr.bf16.mxu1 %v3956_v32 }
 0x343   :  { %3368 = vmatpush3.bf16.msra.mxu0 %v3845_v26 }
 0x344   :  { %3388 = vmatpush3.bf16.msra.mxu1 %v3846_v27  ;;  %3369 = vmatprep.subr.bf16.mxu0 %v3956_v32 }
 0x345   :  { %3389 = vmatprep.subr.bf16.mxu1 %v3956_v32 }
 0x347   :  { %3370 = vmatpush3.bf16.msra.mxu0 %v3847_v28 }
 0x348   :  { %3390 = vmatpush3.bf16.msra.mxu1 %v3848_v30  ;;  %3371 = vmatprep.subr.bf16.mxu0 %v3956_v32 }
 0x349   :  { %3391 = vmatprep.subr.bf16.mxu1 %v3956_v32 }
 0x34b   :  { %3372 = vmatpush3.bf16.msra.mxu0 %v3849_v25 }
 0x34c   :  { %3392 = vmatpush3.bf16.msra.mxu1 %v3850_v36  ;;  %3373 = vmatprep.subr.bf16.mxu0 %v3956_v32 }
 0x34d   :  { %3393 = vmatprep.subr.bf16.mxu1 %v3956_v32 }
 0x34f   :  { %3374 = vmatpush3.bf16.msra.mxu0 %v3851_v63 }
 0x350   :  { %3394 = vmatpush3.bf16.msra.mxu1 %v3852_v7  ;;  %3399 = vmatprep.subr.bf16.mxu0 %v3956_v32  ;;  %v3875_v7 = vld [vmem:[%s4666_s9 + $0x30] sm:$0xff]  }
 0x351   :  { %3419 = vmatprep.subr.bf16.mxu1 %v3956_v32 }
 0x352   :  { %3376 = vmatmul.mubr.bf16.vlgmr.msra.gmra.mrb[20].mxu0 %v2383_v46 }
 0x353   :  { %3396 = vmatmul.mubr.bf16.vlgmr.msra.gmra.mrb[36].mxu1 %v2499_v47  ;;  %3400 = vmatpush3.bf16.msra.mxu0 %v3853_v45 }
 0x354   :  { %3401 = vmatprep.subr.bf16.mxu0 %v3956_v32  ;;  %3415 = vmatprep.mubr.msk.bf16.mxu0 %vm3957_vm0, %v3956_v32 }
 0x355   :  { %3435 = vmatprep.mubr.msk.bf16.mxu1 %vm3957_vm0, %v3956_v32  ;;  %3420 = vmatpush3.bf16.msra.mxu1 %v3861_v62 }
 0x356   :  { %3421 = vmatprep.subr.bf16.mxu1 %v3956_v32 }
 0x357   :  { %3402 = vmatpush3.bf16.msra.mxu0 %v3854_v49 }
 0x358   :  { %3403 = vmatprep.subr.bf16.mxu0 %v3956_v32 }
 0x359   :  { %3422 = vmatpush3.bf16.msra.mxu1 %v3862_v1 }
 0x35a   :  { %3423 = vmatprep.subr.bf16.mxu1 %v3956_v32 }
 0x35b   :  { %3404 = vmatpush3.bf16.msra.mxu0 %v3855_v50 }
 0x35c   :  { %3405 = vmatprep.subr.bf16.mxu0 %v3956_v32 }
 0x35d   :  { %3424 = vmatpush3.bf16.msra.mxu1 %v3863_v2 }
 0x35e   :  { %3425 = vmatprep.subr.bf16.mxu1 %v3956_v32 }
 0x35f   :  { %3406 = vmatpush3.bf16.msra.mxu0 %v3856_v51 }
 0x360   :  { %3407 = vmatprep.subr.bf16.mxu0 %v3956_v32 }
 0x361   :  { %3426 = vmatpush3.bf16.msra.mxu1 %v3864_v3 }
 0x362   :  { %3427 = vmatprep.subr.bf16.mxu1 %v3956_v32 }
 0x363   :  { %3408 = vmatpush3.bf16.msra.mxu0 %v3857_v52 }
 0x364   :  { %3409 = vmatprep.subr.bf16.mxu0 %v3956_v32 }
 0x365   :  { %3428 = vmatpush3.bf16.msra.mxu1 %v3865_v5 }
 0x366   :  { %3429 = vmatprep.subr.bf16.mxu1 %v3956_v32 }
 0x367   :  { %3410 = vmatpush3.bf16.msra.mxu0 %v3858_v44 }
 0x368   :  { %3411 = vmatprep.subr.bf16.mxu0 %v3956_v32 }
 0x369   :  { %3430 = vmatpush3.bf16.msra.mxu1 %v3866_v6 }
 0x36a   :  { %3431 = vmatprep.subr.bf16.mxu1 %v3956_v32 }
 0x36b   :  { %3412 = vmatpush3.bf16.msra.mxu0 %v3859_v56 }
 0x36c   :  { %3413 = vmatprep.subr.bf16.mxu0 %v3956_v32 }
 0x36d   :  { %3432 = vmatpush3.bf16.msra.mxu1 %v3867_v4 }
 0x36e   :  { %3433 = vmatprep.subr.bf16.mxu1 %v3956_v32 }
 0x36f   :  { %3414 = vmatpush3.bf16.msra.mxu0 %v3860_v60 }
 0x370   :  { %3439 = vmatprep.subr.bf16.mxu0 %v3956_v32 }
 0x371   :  { %3434 = vmatpush3.bf16.msra.mxu1 %v3868_v11 }
 0x372   :  { %3416 = vmatmul.mubr.bf16.vlgmr.msra.gmra.mrb[24].mxu0 %v2615_v61 }
 0x373   :  { %3455 = vmatprep.mubr.msk.bf16.mxu0 %vm3957_vm0, %v3956_v32  ;;  %3440 = vmatpush3.bf16.msra.mxu0 %v3869_v9 }
 0x374   :  { %3441 = vmatprep.subr.bf16.mxu0 %v3956_v32 }
 0x377   :  { %3442 = vmatpush3.bf16.msra.mxu0 %v3870_v12 }
 0x378   :  { %3443 = vmatprep.subr.bf16.mxu0 %v3956_v32 }
 0x37b   :  { %3444 = vmatpush3.bf16.msra.mxu0 %v3871_v13 }
 0x37c   :  { %3445 = vmatprep.subr.bf16.mxu0 %v3956_v32 }
 0x37f   :  { %3446 = vmatpush3.bf16.msra.mxu0 %v3872_v10 }
 0x380   :  { %3447 = vmatprep.subr.bf16.mxu0 %v3956_v32 }
 0x383   :  { %3448 = vmatpush3.bf16.msra.mxu0 %v3873_v14 }
 0x384   :  { %3449 = vmatprep.subr.bf16.mxu0 %v3956_v32 }
 0x387   :  { %3450 = vmatpush3.bf16.msra.mxu0 %v3874_v16 }
 0x388   :  { %3451 = vmatprep.subr.bf16.mxu0 %v3956_v32 }
 0x38b   :  { %3452 = vmatpush3.bf16.msra.mxu0 %v3875_v7 }
 0x38c   :  { %3453 = vmatprep.subr.bf16.mxu0 %v3956_v32  ;;  %v3247_v32 = vld [vmem:[%s4667_s10] ss:$0 sm:$0xff] }
 0x38f   :  { %3454 = vmatpush3.bf16.msra.mxu0 %v3876_v8 }
 0x405   :  { %v2280_v15 = vpop.f32.mrb[16].mxu0 }
 0x406   :  { %v2368_v17 = vpop.f32.mrb[32].mxu1  ;;  %v3337_v18 = vpop.f32.mrb[17].mxu0 }
 0x407   :  { %v2369_v19 = vadd.f32 %v2368_v17, %v2280_v15  ;;  %v3357_v20 = vpop.f32.mrb[33].mxu1  ;;  %v2283_v21 = vpop.f32.mrb[18].mxu0 }
 0x408   :  { %v2371_v22 = vpop.f32.mrb[34].mxu1  ;;  %v3338_v23 = vpop.f32.mrb[19].mxu0 }
 0x409   :  { %v3358_v24 = vpop.f32.mrb[35].mxu1 }
 0x425   :  { %v2483_v26 = vpop.f32.mrb[20].mxu0 }
 0x426   :  { %v2489_v27 = vadd.f32 %v2483_v26, %v2369_v19  ;;  %v2599_v28 = vpop.f32.mrb[36].mxu1  ;;  %v3377_v30 = vpop.f32.mrb[21].mxu0 }
 0x427   :  { %v3397_v25 = vpop.f32.mrb[37].mxu1  ;;  %v2486_v33 = vpop.f32.mrb[22].mxu0 }
 0x428   :  { %v2605_v35 = vadd.f32 %v2599_v28, %v2489_v27  ;;  %v2602_v36 = vpop.f32.mrb[38].mxu1  ;;  %v3378_v34 = vpop.f32.mrb[23].mxu0 }
 0x429   :  { %v3398_v37 = vpop.f32.mrb[39].mxu1 }
 0x445   :  { %v2715_v40 = vpop.f32.mrb[24].mxu0 }
 0x446   :  { %v2721_v42 = vadd.f32 %v2715_v40, %v2605_v35  ;;  %v3417_v43 = vpop.f32.mrb[25].mxu0 }
 0x447   :  { %v2718_v29 = vpop.f32.mrb[26].mxu0 }
 0x448   :  { %v2729_v48 = vadd.f32 %v3237_v41, %v2721_v42  ;;  %v3418_v55 = vpop.f32.mrb[27].mxu0 }
 0x44a   :  { %v2730_v0 = vmax.f32 %v2729_v48, 0.0 }
 0x44c   :  { %v2731_v63 = vpack.c.bf16 %v2730_v0, %v2730_v0 }
 0x44e   :  { %3436 = vmatmul.mubr.bf16.vlgmr.msra.gmra.mrb[40].mxu1 %v2731_v63 }
 0x521   :  { %v2837_v45 = vpop.f32.mrb[40].mxu1 }
 0x522   :  { %v2838_v46 = vadd.f32 %v3238_v31, %v2837_v45  ;;  %v3437_v47 = vpop.f32.mrb[41].mxu1 }
 0x523   :  { %v2840_v49 = vpop.f32.mrb[42].mxu1 }
 0x524   :  { %v2843_v50 = vmax.f32 %v2838_v46, 0.0  ;;  %v3438_v51 = vpop.f32.mrb[43].mxu1 }
 0x526   :  { %v2844_v52 = vpack.c.bf16 %v2843_v50, %v2843_v50 }
 0x528   :  { %3456 = vmatmul.mubr.bf16.vlgmr.msra.gmra.mrb[28].mxu0 %v2844_v52 }
 0x5fb   :  { %v2950_v44 = vpop.f32.mrb[28].mxu0 }
 0x5fc   :  { %v2951_v53 = vadd.f32 %v3247_v32, %v2950_v44  ;;  %v3457_v54 = vpop.f32.mrb[29].mxu0 }
 0x5fd   :  { %v2953_v56 = vpop.f32.mrb[30].mxu0 }
 0x5fe   :  { %2956 = vst [vmem:[#allocation9] sm:$0x3] %v2951_v53  ;;  %v3458_v57 = vpop.f32.mrb[31].mxu0 }
 0x5ff   :  { %3932 = shalt.err (!%p3929_p6)
}
 0x600   :  { %s3933_s10 = scalar_lea.hbm %s4668_s11, 32 }
 0x601   :  { %p3934_p7 = scmp.ne.s32.totalorder %s4668_s11, %s3933_s10  ;;  %p3937_p8 = scmp.lt.u32.totalorder %s3933_s10, %s4668_s11 }
 0x603   :  { %p3939_p9 = pnand %p3937_p8, %p3934_p7 }
 0x605   :  { %3942 = shalt.err (!%p3939_p9)
}
 0x606   :  { %2966 = dma.vmem_to_hbm [thread:$0]  %s2964_s24, 32, %s4668_s11, [#allocation6]  }
 0x607   :  { %3947 = dma.done.wait [#allocation6], 32  }
 0x608   :  { %3948 = vsyncadd [#allocation6], 4294967264 }
 0x609   :  { %2970 = vsyncpa [#allocation5], 1 }
 0x60a   :  { %2971 = vsyncpa [#allocation8], 1 }
 0x60b   :  { %2972 = vsyncpa [#allocation6], 1 }

</bundles_post_ra>
